<compile_context>
chip_gen: v7x
topology: tpu7x:2x2x1
jax: 0.10.0
libtpu: 0.0.40
codegen_flags: <defaults>
</compile_context>

<pallas_src>
import functools

import jax
import jax.numpy as jnp
import numpy as np
from jax.experimental import pallas as pl
from jax.experimental.pallas import tpu as pltpu


# --------------------------------------------------------------------------
# Row-tile selection
# --------------------------------------------------------------------------
def _pick_row_tile(h, w, planes, cout, budget_bytes=12 * 1024 * 1024):
  """Largest divisor TR of `h` whose per-step VMEM footprint fits the budget.

  Footprint counted: double-buffered output tile + padded conv1 scratch
  (the input image block and weights are TR-independent).
  """
  best = 1
  for tr in range(1, h + 1):
    if h % tr:
      continue
    out_bytes = 2 * tr * w * cout * 4                # double-buffered output
    scratch_bytes = (tr + 2) * (w + 2) * planes * 4  # padded conv1 scratch
    if out_bytes + scratch_bytes <= budget_bytes:
      best = tr
  return best


# --------------------------------------------------------------------------
# Fused bottleneck kernel
# --------------------------------------------------------------------------
def _bottleneck_kernel(x_ref, w1_ref, s1_ref, b1_ref, w2_ref, s2_ref, b2_ref,
                       w3_ref, s3_ref, b3_ref, o_ref, o1_ref,
                       *, TR, H, W, Cin, planes, Cout):
  """One (batch, row-tile) grid step of the fused bottleneck."""
  t = pl.program_id(1)
  r0 = pl.multiple_of(t * TR, TR)          # first output row of this tile

  def conv1_bn_relu(x2d):                  # (R, Cin) f32 -> (R, planes) f32
    y = jnp.dot(x2d.astype(jnp.bfloat16), w1_ref[...],
                preferred_element_type=jnp.float32)
    return jnp.maximum(y * s1_ref[...] + b1_ref[...], 0.0)

  # ---- conv1 (1x1) + bn1 + relu into spatially padded VMEM scratch --------
  # o1_ref: (TR+2, W+2, planes); scratch row j <-> image row r0-1+j,
  # scratch col c <-> image col c-1.  The padding ring stays zero.
  o1_ref[...] = jnp.zeros_like(o1_ref)
  x_tile = x_ref[0, pl.ds(r0, TR), :, :]                 # (TR, W, Cin) f32
  y1 = conv1_bn_relu(x_tile.reshape(TR * W, Cin))
  o1_ref[pl.ds(1, TR), pl.ds(1, W), :] = y1.reshape(TR, W, planes)

  @pl.when(r0 > 0)                          # top halo row (a valid image row)
  def _():
    xt = x_ref[0, r0 - 1, :, :]                          # (W, Cin)
    o1_ref[0, pl.ds(1, W), :] = conv1_bn_relu(xt)

  @pl.when(r0 + TR < H)                     # bottom halo row
  def _():
    xb = x_ref[0, r0 + TR, :, :]
    o1_ref[TR + 1, pl.ds(1, W), :] = conv1_bn_relu(xb)

  # ---- conv2 (3x3, stride 1, pad 1) + bn2 + relu ---------------------------
  # Shifted patches are loaded straight from the padded scratch with static
  # pl.ds offsets; accumulation is in f32.
  acc = None
  for ky in range(3):
    for kx in range(3):
      patch = o1_ref[pl.ds(ky, TR), pl.ds(kx, W), :]     # (TR, W, planes)
      d = jnp.dot(patch.astype(jnp.bfloat16).reshape(TR * W, planes),
                  w2_ref[ky, kx], preferred_element_type=jnp.float32)
      acc = d if acc is None else acc + d
  o2 = jnp.maximum(acc * s2_ref[...] + b2_ref[...], 0.0).astype(jnp.bfloat16)

  # ---- conv3 (1x1) + bn3 + residual add + relu -----------------------------
  y3 = jnp.dot(o2, w3_ref[...], preferred_element_type=jnp.float32)
  y3 = y3 * s3_ref[...] + b3_ref[...] + x_tile.reshape(TR * W, Cout)
  o_ref[0] = jnp.maximum(y3, 0.0).reshape(TR, W, Cout).astype(o_ref.dtype)


# --------------------------------------------------------------------------
# Forward pass (wrapper, NCHW in / NCHW out, like the PyTorch module)
# --------------------------------------------------------------------------
def bottleneck_forward(x_nchw, p):
  N, Cin, H, W = x_nchw.shape
  planes = p["w1"].shape[1]
  Cout = p["w3"].shape[1]
  assert Cin == Cout, "downsample=None requires in_planes == planes * 4"
  TR = _pick_row_tile(H, W, planes, Cout)

  # NCHW <-> NHWC only at the module boundary (PyTorch convention outside).
  # TODO(synk): in a full network keep activations NHWC between blocks to
  #             avoid these boundary transposes entirely.
  x = jnp.transpose(x_nchw, (0, 2, 3, 1))

  w1 = p["w1"].astype(jnp.bfloat16)          # (Cin, planes)
  w2 = p["w2"].astype(jnp.bfloat16)          # (3, 3, planes, planes)  HWIO
  w3 = p["w3"].astype(jnp.bfloat16)          # (planes, Cout)

  kernel = functools.partial(_bottleneck_kernel, TR=TR, H=H, W=W,
                             Cin=Cin, planes=planes, Cout=Cout)

  out = pl.pallas_call(
      kernel,
      out_shape=jax.ShapeDtypeStruct((N, H, W, Cout), x.dtype),
      grid=(N, H // TR),
      in_specs=[
          # Whole image per batch; block index constant over the row axis so
          # it stays resident across consecutive row-tiles.
          pl.BlockSpec((1, H, W, Cin), lambda n, t: (n, 0, 0, 0)),
          pl.BlockSpec((Cin, planes), lambda n, t: (0, 0)),
          pl.BlockSpec((1, planes), lambda n, t: (0, 0)),
          pl.BlockSpec((1, planes), lambda n, t: (0, 0)),
          pl.BlockSpec((3, 3, planes, planes), lambda n, t: (0, 0, 0, 0)),
          pl.BlockSpec((1, planes), lambda n, t: (0, 0)),
          pl.BlockSpec((1, planes), lambda n, t: (0, 0)),
          pl.BlockSpec((planes, Cout), lambda n, t: (0, 0)),
          pl.BlockSpec((1, Cout), lambda n, t: (0, 0)),
          pl.BlockSpec((1, Cout), lambda n, t: (0, 0)),
      ],
      out_specs=pl.BlockSpec((1, TR, W, Cout), lambda n, t: (n, t, 0, 0)),
      scratch_shapes=[pltpu.VMEM((TR + 2, W + 2, planes), jnp.float32)],
      compiler_params=pltpu.CompilerParams(
          dimension_semantics=("parallel", "parallel")),
  )(x, w1, p["s1"], p["b1"], w2, p["s2"], p["b2"], w3, p["s3"], p["b3"])

  return jnp.transpose(out, (0, 3, 1, 2))


# --------------------------------------------------------------------------
# Parameters (deterministic, synthetic) and folded BatchNorm
# --------------------------------------------------------------------------
def _fold_bn(gamma, beta, mean, var, eps=1e-5):
  scale = gamma / jnp.sqrt(var + eps)
  bias = beta - mean * scale
  return scale[None, :], bias[None, :]   # (1, C) for broadcasting


def init_params(key, in_planes, planes):
  expansion = 4
  ks = jax.random.split(key, 15)
  p = {}
  p["w1"] = jax.random.normal(ks[0], (in_planes, planes),
                              jnp.float32) / np.sqrt(in_planes)
  p["w2"] = jax.random.normal(ks[1], (3, 3, planes, planes),
                              jnp.float32) / np.sqrt(9 * planes)
  p["w3"] = jax.random.normal(ks[2], (planes, planes * expansion),
                              jnp.float32) / np.sqrt(planes)
  for i, c in zip(range(3), (planes, planes, planes * expansion)):
    g = 0.5 + jax.random.uniform(ks[3 + 4 * i], (c,), jnp.float32)
    b = 0.1 * jax.random.normal(ks[4 + 4 * i], (c,), jnp.float32)
    m = 0.1 * jax.random.normal(ks[5 + 4 * i], (c,), jnp.float32)
    v = 0.5 + jax.random.uniform(ks[6 + 4 * i], (c,), jnp.float32)
    p[f"s{i+1}"], p[f"b{i+1}"] = _fold_bn(g, b, m, v)
  return p


# --------------------------------------------------------------------------
# Pure-JAX reference (same bf16-matmul / f32-epilogue numerics as the kernel)
# --------------------------------------------------------------------------
def bottleneck_ref(x_nchw, p):
  x = jnp.transpose(x_nchw, (0, 2, 3, 1))

  def conv(inp, w_hwio):
    return jax.lax.conv_general_dilated(
        inp.astype(jnp.bfloat16), w_hwio.astype(jnp.bfloat16), (1, 1), "SAME",
        dimension_numbers=("NHWC", "HWIO", "NHWC"),
        preferred_element_type=jnp.float32)

  o = conv(x, p["w1"][None, None])                    # 1x1
  o = jnp.maximum(o * p["s1"][0] + p["b1"][0], 0.0)
  o = conv(o, p["w2"])                                # 3x3, pad 1
  o = jnp.maximum(o * p["s2"][0] + p["b2"][0], 0.0)
  o = conv(o, p["w3"][None, None])                    # 1x1
  o = o * p["s3"][0] + p["b3"][0] + x
  o = jnp.maximum(o, 0.0)
  return jnp.transpose(o, (0, 3, 1, 2))


# --------------------------------------------------------------------------
if __name__ == "__main__":
  key = jax.random.PRNGKey(0)
  k_x, k_p = jax.random.split(key)

  # Small but TPU-friendly shapes: Cin = Cout = 4*planes = 128 keeps the
  # matmul depth and the output stores lane-dense (last dim = 128).
  N, planes, H, W = 2, 32, 16, 16
  in_planes = planes * 4
  x = jax.random.normal(k_x, (N, in_planes, H, W), jnp.float32)
  params = init_params(k_p, in_planes, planes)

  out = jax.block_until_ready(bottleneck_forward(x, params))
  ref = jax.block_until_ready(bottleneck_ref(x, params))
  np.testing.assert_allclose(np.asarray(out), np.asarray(ref),
                             rtol=2e-2, atol=2e-2)
  assert out.shape == (N, in_planes, H, W)
  print("KERNEL_OK")
</pallas_src>

<mosaic_0001>
module attributes {stable_mosaic.version = 11 : i64} {
  func.func @_bottleneck_kernel(%arg0: i32, %arg1: i32, %arg2: memref<1x16x16x128xf32, #tpu.memory_space<vmem>>, %arg3: memref<128x32xbf16, #tpu.memory_space<vmem>>, %arg4: memref<1x32xf32, #tpu.memory_space<vmem>>, %arg5: memref<1x32xf32, #tpu.memory_space<vmem>>, %arg6: memref<3x3x32x32xbf16, #tpu.memory_space<vmem>>, %arg7: memref<1x32xf32, #tpu.memory_space<vmem>>, %arg8: memref<1x32xf32, #tpu.memory_space<vmem>>, %arg9: memref<32x128xbf16, #tpu.memory_space<vmem>>, %arg10: memref<1x128xf32, #tpu.memory_space<vmem>>, %arg11: memref<1x128xf32, #tpu.memory_space<vmem>>, %arg12: memref<1x16x16x128xf32, #tpu.memory_space<vmem>>, %arg13: memref<18x18x32xf32, #tpu.memory_space<vmem>>) attributes {dimension_semantics = [#tpu.dimension_semantics<parallel>, #tpu.dimension_semantics<parallel>], iteration_bounds = array<i64: 2, 1>, scalar_prefetch = 0 : i64, scratch_operands = 1 : i64, tpu.core_type = #tpu.core_type<tc>, window_params = [{transform_indices = @transform_0, window_bounds = array<i64: 1, 16, 16, 128>}, {pipeline_mode = #tpu.pipeline_mode<synchronous>, transform_indices = @transform_1, window_bounds = array<i64: 128, 32>}, {pipeline_mode = #tpu.pipeline_mode<synchronous>, transform_indices = @transform_2, window_bounds = array<i64: 1, 32>}, {pipeline_mode = #tpu.pipeline_mode<synchronous>, transform_indices = @transform_3, window_bounds = array<i64: 1, 32>}, {pipeline_mode = #tpu.pipeline_mode<synchronous>, transform_indices = @transform_4, window_bounds = array<i64: 3, 3, 32, 32>}, {pipeline_mode = #tpu.pipeline_mode<synchronous>, transform_indices = @transform_5, window_bounds = array<i64: 1, 32>}, {pipeline_mode = #tpu.pipeline_mode<synchronous>, transform_indices = @transform_6, window_bounds = array<i64: 1, 32>}, {pipeline_mode = #tpu.pipeline_mode<synchronous>, transform_indices = @transform_7, window_bounds = array<i64: 32, 128>}, {pipeline_mode = #tpu.pipeline_mode<synchronous>, transform_indices = @transform_8, window_bounds = array<i64: 1, 128>}, {pipeline_mode = #tpu.pipeline_mode<synchronous>, transform_indices = @transform_9, window_bounds = array<i64: 1, 128>}, {transform_indices = @transform_10, window_bounds = array<i64: 1, 16, 16, 128>}]} {
    %c16_i32 = arith.constant 16 : i32
    %0 = arith.muli %arg1, %c16_i32 : i32
    %1 = tpu.assume_multiple %0, 16 : i32
    %cst = arith.constant 0.000000e+00 : f32
    %2 = vector.broadcast %cst : f32 to vector<18x18x32xf32>
    %c0 = arith.constant 0 : index
    %c0_0 = arith.constant 0 : index
    %c0_1 = arith.constant 0 : index
    %3 = vector.load %arg13[%c0, %c0_0, %c0_1] : memref<18x18x32xf32, #tpu.memory_space<vmem>>, vector<18x18x32xf32>
    tpu.vector_store %arg13[%c0, %c0_0, %c0_1], %2 {strides = array<i32>} : memref<18x18x32xf32, #tpu.memory_space<vmem>>, vector<18x18x32xf32>,
    %c0_2 = arith.constant 0 : index
    %4 = arith.index_cast %1 : i32 to index
    %c0_3 = arith.constant 0 : index
    %c0_4 = arith.constant 0 : index
    %5 = vector.load %arg2[%c0_2, %4, %c0_3, %c0_4] : memref<1x16x16x128xf32, #tpu.memory_space<vmem>>, vector<1x16x16x128xf32>
    %6 = vector.shape_cast %5 : vector<1x16x16x128xf32> to vector<16x16x128xf32>
    %7 = vector.shape_cast %6 : vector<16x16x128xf32> to vector<256x128xf32>
    %8 = arith.truncf %7 : vector<256x128xf32> to vector<256x128xbf16>
    %c0_5 = arith.constant 0 : index
    %c0_6 = arith.constant 0 : index
    %9 = vector.load %arg3[%c0_5, %c0_6] : memref<128x32xbf16, #tpu.memory_space<vmem>>, vector<128x32xbf16>
    %cst_7 = arith.constant dense<0.000000e+00> : vector<256x32xf32>
    %10 = tpu.matmul %8, %9, %cst_7 {dimension_numbers = #tpu.dot_dimension_numbers<[1], [0], [0], [1], [0, 0, 1, 1], [], []>} : vector<256x128xbf16>, vector<128x32xbf16>, vector<256x32xf32> -> vector<256x32xf32>
    %c0_8 = arith.constant 0 : index
    %c0_9 = arith.constant 0 : index
    %11 = vector.load %arg4[%c0_8, %c0_9] : memref<1x32xf32, #tpu.memory_space<vmem>>, vector<1x32xf32>
    %12 = vector.broadcast %11 : vector<1x32xf32> to vector<256x32xf32>
    %13 = arith.mulf %10, %12 : vector<256x32xf32>
    %c0_10 = arith.constant 0 : index
    %c0_11 = arith.constant 0 : index
    %14 = vector.load %arg5[%c0_10, %c0_11] : memref<1x32xf32, #tpu.memory_space<vmem>>, vector<1x32xf32>
    %15 = vector.broadcast %14 : vector<1x32xf32> to vector<256x32xf32>
    %16 = arith.addf %13, %15 : vector<256x32xf32>
    %cst_12 = arith.constant 0.000000e+00 : f32
    %17 = vector.broadcast %cst_12 : f32 to vector<256x32xf32>
    %18 = arith.maximumf %16, %17 : vector<256x32xf32>
    %19 = vector.shape_cast %18 : vector<256x32xf32> to vector<16x16x32xf32>
    %c1 = arith.constant 1 : index
    %c1_13 = arith.constant 1 : index
    %c0_14 = arith.constant 0 : index
    %20 = vector.load %arg13[%c1, %c1_13, %c0_14] : memref<18x18x32xf32, #tpu.memory_space<vmem>>, vector<16x16x32xf32>
    tpu.vector_store %arg13[%c1, %c1_13, %c0_14], %19 {strides = array<i32>} : memref<18x18x32xf32, #tpu.memory_space<vmem>>, vector<16x16x32xf32>,
    %c0_i32 = arith.constant 0 : i32
    %21 = arith.cmpi sgt, %1, %c0_i32 : i32
    %22 = arith.extui %21 : i1 to i32
    %c0_i32_15 = arith.constant 0 : i32
    %23 = arith.cmpi ne, %22, %c0_i32_15 : i32
    scf.if %23 {
      %c1_i32 = arith.constant 1 : i32
      %115 = arith.subi %1, %c1_i32 : i32
      %c0_107 = arith.constant 0 : index
      %116 = arith.index_cast %115 : i32 to index
      %c0_108 = arith.constant 0 : index
      %c0_109 = arith.constant 0 : index
      %117 = vector.load %arg2[%c0_107, %116, %c0_108, %c0_109] : memref<1x16x16x128xf32, #tpu.memory_space<vmem>>, vector<1x1x16x128xf32>
      %118 = vector.shape_cast %117 : vector<1x1x16x128xf32> to vector<16x128xf32>
      %119 = arith.truncf %118 : vector<16x128xf32> to vector<16x128xbf16>
      %c0_110 = arith.constant 0 : index
      %c0_111 = arith.constant 0 : index
      %120 = vector.load %arg3[%c0_110, %c0_111] : memref<128x32xbf16, #tpu.memory_space<vmem>>, vector<128x32xbf16>
      %cst_112 = arith.constant dense<0.000000e+00> : vector<16x32xf32>
      %121 = tpu.matmul %119, %120, %cst_112 {dimension_numbers = #tpu.dot_dimension_numbers<[1], [0], [0], [1], [0, 0, 1, 1], [], []>} : vector<16x128xbf16>, vector<128x32xbf16>, vector<16x32xf32> -> vector<16x32xf32>
      %c0_113 = arith.constant 0 : index
      %c0_114 = arith.constant 0 : index
      %122 = vector.load %arg4[%c0_113, %c0_114] : memref<1x32xf32, #tpu.memory_space<vmem>>, vector<1x32xf32>
      %123 = vector.broadcast %122 : vector<1x32xf32> to vector<16x32xf32>
      %124 = arith.mulf %121, %123 : vector<16x32xf32>
      %c0_115 = arith.constant 0 : index
      %c0_116 = arith.constant 0 : index
      %125 = vector.load %arg5[%c0_115, %c0_116] : memref<1x32xf32, #tpu.memory_space<vmem>>, vector<1x32xf32>
      %126 = vector.broadcast %125 : vector<1x32xf32> to vector<16x32xf32>
      %127 = arith.addf %124, %126 : vector<16x32xf32>
      %cst_117 = arith.constant 0.000000e+00 : f32
      %128 = vector.broadcast %cst_117 : f32 to vector<16x32xf32>
      %129 = arith.maximumf %127, %128 : vector<16x32xf32>
      %c0_118 = arith.constant 0 : index
      %c1_119 = arith.constant 1 : index
      %c0_120 = arith.constant 0 : index
      %130 = vector.load %arg13[%c0_118, %c1_119, %c0_120] : memref<18x18x32xf32, #tpu.memory_space<vmem>>, vector<1x16x32xf32>
      %131 = vector.shape_cast %130 : vector<1x16x32xf32> to vector<16x32xf32>
      %132 = vector.shape_cast %129 : vector<16x32xf32> to vector<1x16x32xf32>
      tpu.vector_store %arg13[%c0_118, %c1_119, %c0_120], %132 {strides = array<i32>} : memref<18x18x32xf32, #tpu.memory_space<vmem>>, vector<1x16x32xf32>,
    } else {
    }
    %c16_i32_16 = arith.constant 16 : i32
    %24 = arith.addi %1, %c16_i32_16 : i32
    %c16_i32_17 = arith.constant 16 : i32
    %25 = arith.cmpi slt, %24, %c16_i32_17 : i32
    %26 = arith.extui %25 : i1 to i32
    %c0_i32_18 = arith.constant 0 : i32
    %27 = arith.cmpi ne, %26, %c0_i32_18 : i32
    scf.if %27 {
      %c16_i32_107 = arith.constant 16 : i32
      %115 = arith.addi %1, %c16_i32_107 : i32
      %c0_108 = arith.constant 0 : index
      %116 = arith.index_cast %115 : i32 to index
      %c0_109 = arith.constant 0 : index
      %c0_110 = arith.constant 0 : index
      %117 = vector.load %arg2[%c0_108, %116, %c0_109, %c0_110] : memref<1x16x16x128xf32, #tpu.memory_space<vmem>>, vector<1x1x16x128xf32>
      %118 = vector.shape_cast %117 : vector<1x1x16x128xf32> to vector<16x128xf32>
      %119 = arith.truncf %118 : vector<16x128xf32> to vector<16x128xbf16>
      %c0_111 = arith.constant 0 : index
      %c0_112 = arith.constant 0 : index
      %120 = vector.load %arg3[%c0_111, %c0_112] : memref<128x32xbf16, #tpu.memory_space<vmem>>, vector<128x32xbf16>
      %cst_113 = arith.constant dense<0.000000e+00> : vector<16x32xf32>
      %121 = tpu.matmul %119, %120, %cst_113 {dimension_numbers = #tpu.dot_dimension_numbers<[1], [0], [0], [1], [0, 0, 1, 1], [], []>} : vector<16x128xbf16>, vector<128x32xbf16>, vector<16x32xf32> -> vector<16x32xf32>
      %c0_114 = arith.constant 0 : index
      %c0_115 = arith.constant 0 : index
      %122 = vector.load %arg4[%c0_114, %c0_115] : memref<1x32xf32, #tpu.memory_space<vmem>>, vector<1x32xf32>
      %123 = vector.broadcast %122 : vector<1x32xf32> to vector<16x32xf32>
      %124 = arith.mulf %121, %123 : vector<16x32xf32>
      %c0_116 = arith.constant 0 : index
      %c0_117 = arith.constant 0 : index
      %125 = vector.load %arg5[%c0_116, %c0_117] : memref<1x32xf32, #tpu.memory_space<vmem>>, vector<1x32xf32>
      %126 = vector.broadcast %125 : vector<1x32xf32> to vector<16x32xf32>
      %127 = arith.addf %124, %126 : vector<16x32xf32>
      %cst_118 = arith.constant 0.000000e+00 : f32
      %128 = vector.broadcast %cst_118 : f32 to vector<16x32xf32>
      %129 = arith.maximumf %127, %128 : vector<16x32xf32>
      %c17 = arith.constant 17 : index
      %c1_119 = arith.constant 1 : index
      %c0_120 = arith.constant 0 : index
      %130 = vector.load %arg13[%c17, %c1_119, %c0_120] : memref<18x18x32xf32, #tpu.memory_space<vmem>>, vector<1x16x32xf32>
      %131 = vector.shape_cast %130 : vector<1x16x32xf32> to vector<16x32xf32>
      %132 = vector.shape_cast %129 : vector<16x32xf32> to vector<1x16x32xf32>
      tpu.vector_store %arg13[%c17, %c1_119, %c0_120], %132 {strides = array<i32>} : memref<18x18x32xf32, #tpu.memory_space<vmem>>, vector<1x16x32xf32>,
    } else {
    }
    %c0_19 = arith.constant 0 : index
    %c0_20 = arith.constant 0 : index
    %c0_21 = arith.constant 0 : index
    %28 = vector.load %arg13[%c0_19, %c0_20, %c0_21] : memref<18x18x32xf32, #tpu.memory_space<vmem>>, vector<16x16x32xf32>
    %29 = arith.truncf %28 : vector<16x16x32xf32> to vector<16x16x32xbf16>
    %30 = vector.shape_cast %29 : vector<16x16x32xbf16> to vector<256x32xbf16>
    %c0_22 = arith.constant 0 : index
    %c0_23 = arith.constant 0 : index
    %c0_24 = arith.constant 0 : index
    %c0_25 = arith.constant 0 : index
    %31 = vector.load %arg6[%c0_22, %c0_23, %c0_24, %c0_25] : memref<3x3x32x32xbf16, #tpu.memory_space<vmem>>, vector<1x1x32x32xbf16>
    %32 = vector.shape_cast %31 : vector<1x1x32x32xbf16> to vector<32x32xbf16>
    %cst_26 = arith.constant dense<0.000000e+00> : vector<256x32xf32>
    %33 = tpu.matmul %30, %32, %cst_26 {dimension_numbers = #tpu.dot_dimension_numbers<[1], [0], [0], [1], [0, 0, 1, 1], [], []>} : vector<256x32xbf16>, vector<32x32xbf16>, vector<256x32xf32> -> vector<256x32xf32>
    %c0_27 = arith.constant 0 : index
    %c1_28 = arith.constant 1 : index
    %c0_29 = arith.constant 0 : index
    %34 = vector.load %arg13[%c0_27, %c1_28, %c0_29] : memref<18x18x32xf32, #tpu.memory_space<vmem>>, vector<16x16x32xf32>
    %35 = arith.truncf %34 : vector<16x16x32xf32> to vector<16x16x32xbf16>
    %36 = vector.shape_cast %35 : vector<16x16x32xbf16> to vector<256x32xbf16>
    %c0_30 = arith.constant 0 : index
    %c1_31 = arith.constant 1 : index
    %c0_32 = arith.constant 0 : index
    %c0_33 = arith.constant 0 : index
    %37 = vector.load %arg6[%c0_30, %c1_31, %c0_32, %c0_33] : memref<3x3x32x32xbf16, #tpu.memory_space<vmem>>, vector<1x1x32x32xbf16>
    %38 = vector.shape_cast %37 : vector<1x1x32x32xbf16> to vector<32x32xbf16>
    %cst_34 = arith.constant dense<0.000000e+00> : vector<256x32xf32>
    %39 = tpu.matmul %36, %38, %cst_34 {dimension_numbers = #tpu.dot_dimension_numbers<[1], [0], [0], [1], [0, 0, 1, 1], [], []>} : vector<256x32xbf16>, vector<32x32xbf16>, vector<256x32xf32> -> vector<256x32xf32>
    %40 = arith.addf %33, %39 : vector<256x32xf32>
    %c0_35 = arith.constant 0 : index
    %c2 = arith.constant 2 : index
    %c0_36 = arith.constant 0 : index
    %41 = vector.load %arg13[%c0_35, %c2, %c0_36] : memref<18x18x32xf32, #tpu.memory_space<vmem>>, vector<16x16x32xf32>
    %42 = arith.truncf %41 : vector<16x16x32xf32> to vector<16x16x32xbf16>
    %43 = vector.shape_cast %42 : vector<16x16x32xbf16> to vector<256x32xbf16>
    %c0_37 = arith.constant 0 : index
    %c2_38 = arith.constant 2 : index
    %c0_39 = arith.constant 0 : index
    %c0_40 = arith.constant 0 : index
    %44 = vector.load %arg6[%c0_37, %c2_38, %c0_39, %c0_40] : memref<3x3x32x32xbf16, #tpu.memory_space<vmem>>, vector<1x1x32x32xbf16>
    %45 = vector.shape_cast %44 : vector<1x1x32x32xbf16> to vector<32x32xbf16>
    %cst_41 = arith.constant dense<0.000000e+00> : vector<256x32xf32>
    %46 = tpu.matmul %43, %45, %cst_41 {dimension_numbers = #tpu.dot_dimension_numbers<[1], [0], [0], [1], [0, 0, 1, 1], [], []>} : vector<256x32xbf16>, vector<32x32xbf16>, vector<256x32xf32> -> vector<256x32xf32>
    %47 = arith.addf %40, %46 : vector<256x32xf32>
    %c1_42 = arith.constant 1 : index
    %c0_43 = arith.constant 0 : index
    %c0_44 = arith.constant 0 : index
    %48 = vector.load %arg13[%c1_42, %c0_43, %c0_44] : memref<18x18x32xf32, #tpu.memory_space<vmem>>, vector<16x16x32xf32>
    %49 = arith.truncf %48 : vector<16x16x32xf32> to vector<16x16x32xbf16>
    %50 = vector.shape_cast %49 : vector<16x16x32xbf16> to vector<256x32xbf16>
    %c1_45 = arith.constant 1 : index
    %c0_46 = arith.constant 0 : index
    %c0_47 = arith.constant 0 : index
    %c0_48 = arith.constant 0 : index
    %51 = vector.load %arg6[%c1_45, %c0_46, %c0_47, %c0_48] : memref<3x3x32x32xbf16, #tpu.memory_space<vmem>>, vector<1x1x32x32xbf16>
    %52 = vector.shape_cast %51 : vector<1x1x32x32xbf16> to vector<32x32xbf16>
    %cst_49 = arith.constant dense<0.000000e+00> : vector<256x32xf32>
    %53 = tpu.matmul %50, %52, %cst_49 {dimension_numbers = #tpu.dot_dimension_numbers<[1], [0], [0], [1], [0, 0, 1, 1], [], []>} : vector<256x32xbf16>, vector<32x32xbf16>, vector<256x32xf32> -> vector<256x32xf32>
    %54 = arith.addf %47, %53 : vector<256x32xf32>
    %c1_50 = arith.constant 1 : index
    %c1_51 = arith.constant 1 : index
    %c0_52 = arith.constant 0 : index
    %55 = vector.load %arg13[%c1_50, %c1_51, %c0_52] : memref<18x18x32xf32, #tpu.memory_space<vmem>>, vector<16x16x32xf32>
    %56 = arith.truncf %55 : vector<16x16x32xf32> to vector<16x16x32xbf16>
    %57 = vector.shape_cast %56 : vector<16x16x32xbf16> to vector<256x32xbf16>
    %c1_53 = arith.constant 1 : index
    %c1_54 = arith.constant 1 : index
    %c0_55 = arith.constant 0 : index
    %c0_56 = arith.constant 0 : index
    %58 = vector.load %arg6[%c1_53, %c1_54, %c0_55, %c0_56] : memref<3x3x32x32xbf16, #tpu.memory_space<vmem>>, vector<1x1x32x32xbf16>
    %59 = vector.shape_cast %58 : vector<1x1x32x32xbf16> to vector<32x32xbf16>
    %cst_57 = arith.constant dense<0.000000e+00> : vector<256x32xf32>
    %60 = tpu.matmul %57, %59, %cst_57 {dimension_numbers = #tpu.dot_dimension_numbers<[1], [0], [0], [1], [0, 0, 1, 1], [], []>} : vector<256x32xbf16>, vector<32x32xbf16>, vector<256x32xf32> -> vector<256x32xf32>
    %61 = arith.addf %54, %60 : vector<256x32xf32>
    %c1_58 = arith.constant 1 : index
    %c2_59 = arith.constant 2 : index
    %c0_60 = arith.constant 0 : index
    %62 = vector.load %arg13[%c1_58, %c2_59, %c0_60] : memref<18x18x32xf32, #tpu.memory_space<vmem>>, vector<16x16x32xf32>
    %63 = arith.truncf %62 : vector<16x16x32xf32> to vector<16x16x32xbf16>
    %64 = vector.shape_cast %63 : vector<16x16x32xbf16> to vector<256x32xbf16>
    %c1_61 = arith.constant 1 : index
    %c2_62 = arith.constant 2 : index
    %c0_63 = arith.constant 0 : index
    %c0_64 = arith.constant 0 : index
    %65 = vector.load %arg6[%c1_61, %c2_62, %c0_63, %c0_64] : memref<3x3x32x32xbf16, #tpu.memory_space<vmem>>, vector<1x1x32x32xbf16>
    %66 = vector.shape_cast %65 : vector<1x1x32x32xbf16> to vector<32x32xbf16>
    %cst_65 = arith.constant dense<0.000000e+00> : vector<256x32xf32>
    %67 = tpu.matmul %64, %66, %cst_65 {dimension_numbers = #tpu.dot_dimension_numbers<[1], [0], [0], [1], [0, 0, 1, 1], [], []>} : vector<256x32xbf16>, vector<32x32xbf16>, vector<256x32xf32> -> vector<256x32xf32>
    %68 = arith.addf %61, %67 : vector<256x32xf32>
    %c2_66 = arith.constant 2 : index
    %c0_67 = arith.constant 0 : index
    %c0_68 = arith.constant 0 : index
    %69 = vector.load %arg13[%c2_66, %c0_67, %c0_68] : memref<18x18x32xf32, #tpu.memory_space<vmem>>, vector<16x16x32xf32>
    %70 = arith.truncf %69 : vector<16x16x32xf32> to vector<16x16x32xbf16>
    %71 = vector.shape_cast %70 : vector<16x16x32xbf16> to vector<256x32xbf16>
    %c2_69 = arith.constant 2 : index
    %c0_70 = arith.constant 0 : index
    %c0_71 = arith.constant 0 : index
    %c0_72 = arith.constant 0 : index
    %72 = vector.load %arg6[%c2_69, %c0_70, %c0_71, %c0_72] : memref<3x3x32x32xbf16, #tpu.memory_space<vmem>>, vector<1x1x32x32xbf16>
    %73 = vector.shape_cast %72 : vector<1x1x32x32xbf16> to vector<32x32xbf16>
    %cst_73 = arith.constant dense<0.000000e+00> : vector<256x32xf32>
    %74 = tpu.matmul %71, %73, %cst_73 {dimension_numbers = #tpu.dot_dimension_numbers<[1], [0], [0], [1], [0, 0, 1, 1], [], []>} : vector<256x32xbf16>, vector<32x32xbf16>, vector<256x32xf32> -> vector<256x32xf32>
    %75 = arith.addf %68, %74 : vector<256x32xf32>
    %c2_74 = arith.constant 2 : index
    %c1_75 = arith.constant 1 : index
    %c0_76 = arith.constant 0 : index
    %76 = vector.load %arg13[%c2_74, %c1_75, %c0_76] : memref<18x18x32xf32, #tpu.memory_space<vmem>>, vector<16x16x32xf32>
    %77 = arith.truncf %76 : vector<16x16x32xf32> to vector<16x16x32xbf16>
    %78 = vector.shape_cast %77 : vector<16x16x32xbf16> to vector<256x32xbf16>
    %c2_77 = arith.constant 2 : index
    %c1_78 = arith.constant 1 : index
    %c0_79 = arith.constant 0 : index
    %c0_80 = arith.constant 0 : index
    %79 = vector.load %arg6[%c2_77, %c1_78, %c0_79, %c0_80] : memref<3x3x32x32xbf16, #tpu.memory_space<vmem>>, vector<1x1x32x32xbf16>
    %80 = vector.shape_cast %79 : vector<1x1x32x32xbf16> to vector<32x32xbf16>
    %cst_81 = arith.constant dense<0.000000e+00> : vector<256x32xf32>
    %81 = tpu.matmul %78, %80, %cst_81 {dimension_numbers = #tpu.dot_dimension_numbers<[1], [0], [0], [1], [0, 0, 1, 1], [], []>} : vector<256x32xbf16>, vector<32x32xbf16>, vector<256x32xf32> -> vector<256x32xf32>
    %82 = arith.addf %75, %81 : vector<256x32xf32>
    %c2_82 = arith.constant 2 : index
    %c2_83 = arith.constant 2 : index
    %c0_84 = arith.constant 0 : index
    %83 = vector.load %arg13[%c2_82, %c2_83, %c0_84] : memref<18x18x32xf32, #tpu.memory_space<vmem>>, vector<16x16x32xf32>
    %84 = arith.truncf %83 : vector<16x16x32xf32> to vector<16x16x32xbf16>
    %85 = vector.shape_cast %84 : vector<16x16x32xbf16> to vector<256x32xbf16>
    %c2_85 = arith.constant 2 : index
    %c2_86 = arith.constant 2 : index
    %c0_87 = arith.constant 0 : index
    %c0_88 = arith.constant 0 : index
    %86 = vector.load %arg6[%c2_85, %c2_86, %c0_87, %c0_88] : memref<3x3x32x32xbf16, #tpu.memory_space<vmem>>, vector<1x1x32x32xbf16>
    %87 = vector.shape_cast %86 : vector<1x1x32x32xbf16> to vector<32x32xbf16>
    %cst_89 = arith.constant dense<0.000000e+00> : vector<256x32xf32>
    %88 = tpu.matmul %85, %87, %cst_89 {dimension_numbers = #tpu.dot_dimension_numbers<[1], [0], [0], [1], [0, 0, 1, 1], [], []>} : vector<256x32xbf16>, vector<32x32xbf16>, vector<256x32xf32> -> vector<256x32xf32>
    %89 = arith.addf %82, %88 : vector<256x32xf32>
    %c0_90 = arith.constant 0 : index
    %c0_91 = arith.constant 0 : index
    %90 = vector.load %arg7[%c0_90, %c0_91] : memref<1x32xf32, #tpu.memory_space<vmem>>, vector<1x32xf32>
    %91 = vector.broadcast %90 : vector<1x32xf32> to vector<256x32xf32>
    %92 = arith.mulf %89, %91 : vector<256x32xf32>
    %c0_92 = arith.constant 0 : index
    %c0_93 = arith.constant 0 : index
    %93 = vector.load %arg8[%c0_92, %c0_93] : memref<1x32xf32, #tpu.memory_space<vmem>>, vector<1x32xf32>
    %94 = vector.broadcast %93 : vector<1x32xf32> to vector<256x32xf32>
    %95 = arith.addf %92, %94 : vector<256x32xf32>
    %cst_94 = arith.constant 0.000000e+00 : f32
    %96 = vector.broadcast %cst_94 : f32 to vector<256x32xf32>
    %97 = arith.maximumf %95, %96 : vector<256x32xf32>
    %98 = arith.truncf %97 : vector<256x32xf32> to vector<256x32xbf16>
    %c0_95 = arith.constant 0 : index
    %c0_96 = arith.constant 0 : index
    %99 = vector.load %arg9[%c0_95, %c0_96] : memref<32x128xbf16, #tpu.memory_space<vmem>>, vector<32x128xbf16>
    %cst_97 = arith.constant dense<0.000000e+00> : vector<256x128xf32>
    %100 = tpu.matmul %98, %99, %cst_97 {dimension_numbers = #tpu.dot_dimension_numbers<[1], [0], [0], [1], [0, 0, 1, 1], [], []>} : vector<256x32xbf16>, vector<32x128xbf16>, vector<256x128xf32> -> vector<256x128xf32>
    %c0_98 = arith.constant 0 : index
    %c0_99 = arith.constant 0 : index
    %101 = vector.load %arg10[%c0_98, %c0_99] : memref<1x128xf32, #tpu.memory_space<vmem>>, vector<1x128xf32>
    %102 = vector.broadcast %101 : vector<1x128xf32> to vector<256x128xf32>
    %103 = arith.mulf %100, %102 : vector<256x128xf32>
    %c0_100 = arith.constant 0 : index
    %c0_101 = arith.constant 0 : index
    %104 = vector.load %arg11[%c0_100, %c0_101] : memref<1x128xf32, #tpu.memory_space<vmem>>, vector<1x128xf32>
    %105 = vector.broadcast %104 : vector<1x128xf32> to vector<256x128xf32>
    %106 = arith.addf %103, %105 : vector<256x128xf32>
    %107 = vector.shape_cast %6 : vector<16x16x128xf32> to vector<256x128xf32>
    %108 = arith.addf %106, %107 : vector<256x128xf32>
    %cst_102 = arith.constant 0.000000e+00 : f32
    %109 = vector.broadcast %cst_102 : f32 to vector<256x128xf32>
    %110 = arith.maximumf %108, %109 : vector<256x128xf32>
    %111 = vector.shape_cast %110 : vector<256x128xf32> to vector<16x16x128xf32>
    %c0_103 = arith.constant 0 : index
    %c0_104 = arith.constant 0 : index
    %c0_105 = arith.constant 0 : index
    %c0_106 = arith.constant 0 : index
    %112 = vector.load %arg12[%c0_103, %c0_104, %c0_105, %c0_106] : memref<1x16x16x128xf32, #tpu.memory_space<vmem>>, vector<1x16x16x128xf32>
    %113 = vector.shape_cast %112 : vector<1x16x16x128xf32> to vector<16x16x128xf32>
    %114 = vector.shape_cast %111 : vector<16x16x128xf32> to vector<1x16x16x128xf32>
    tpu.vector_store %arg12[%c0_103, %c0_104, %c0_105, %c0_106], %114 {strides = array<i32>} : memref<1x16x16x128xf32, #tpu.memory_space<vmem>>, vector<1x16x16x128xf32>,
    return
  }
  func.func @transform_0(%arg0: i32, %arg1: i32) -> (i32, i32, i32, i32) {
    %c0_i32 = arith.constant 0 : i32
    %c0_i32_0 = arith.constant 0 : i32
    %c0_i32_1 = arith.constant 0 : i32
    %c0_i32_2 = arith.constant 0 : i32
    return %arg0, %c0_i32, %c0_i32_0, %c0_i32_1 : i32, i32, i32, i32
  }
  func.func @transform_1(%arg0: i32, %arg1: i32) -> (i32, i32) {
    %c0_i32 = arith.constant 0 : i32
    %c0_i32_0 = arith.constant 0 : i32
    %c0_i32_1 = arith.constant 0 : i32
    return %c0_i32, %c0_i32_0 : i32, i32
  }
  func.func @transform_2(%arg0: i32, %arg1: i32) -> (i32, i32) {
    %c0_i32 = arith.constant 0 : i32
    %c0_i32_0 = arith.constant 0 : i32
    %c0_i32_1 = arith.constant 0 : i32
    return %c0_i32, %c0_i32_0 : i32, i32
  }
  func.func @transform_3(%arg0: i32, %arg1: i32) -> (i32, i32) {
    %c0_i32 = arith.constant 0 : i32
    %c0_i32_0 = arith.constant 0 : i32
    %c0_i32_1 = arith.constant 0 : i32
    return %c0_i32, %c0_i32_0 : i32, i32
  }
  func.func @transform_4(%arg0: i32, %arg1: i32) -> (i32, i32, i32, i32) {
    %c0_i32 = arith.constant 0 : i32
    %c0_i32_0 = arith.constant 0 : i32
    %c0_i32_1 = arith.constant 0 : i32
    %c0_i32_2 = arith.constant 0 : i32
    %c0_i32_3 = arith.constant 0 : i32
    return %c0_i32, %c0_i32_0, %c0_i32_1, %c0_i32_2 : i32, i32, i32, i32
  }
  func.func @transform_5(%arg0: i32, %arg1: i32) -> (i32, i32) {
    %c0_i32 = arith.constant 0 : i32
    %c0_i32_0 = arith.constant 0 : i32
    %c0_i32_1 = arith.constant 0 : i32
    return %c0_i32, %c0_i32_0 : i32, i32
  }
  func.func @transform_6(%arg0: i32, %arg1: i32) -> (i32, i32) {
    %c0_i32 = arith.constant 0 : i32
    %c0_i32_0 = arith.constant 0 : i32
    %c0_i32_1 = arith.constant 0 : i32
    return %c0_i32, %c0_i32_0 : i32, i32
  }
  func.func @transform_7(%arg0: i32, %arg1: i32) -> (i32, i32) {
    %c0_i32 = arith.constant 0 : i32
    %c0_i32_0 = arith.constant 0 : i32
    %c0_i32_1 = arith.constant 0 : i32
    return %c0_i32, %c0_i32_0 : i32, i32
  }
  func.func @transform_8(%arg0: i32, %arg1: i32) -> (i32, i32) {
    %c0_i32 = arith.constant 0 : i32
    %c0_i32_0 = arith.constant 0 : i32
    %c0_i32_1 = arith.constant 0 : i32
    return %c0_i32, %c0_i32_0 : i32, i32
  }
  func.func @transform_9(%arg0: i32, %arg1: i32) -> (i32, i32) {
    %c0_i32 = arith.constant 0 : i32
    %c0_i32_0 = arith.constant 0 : i32
    %c0_i32_1 = arith.constant 0 : i32
    return %c0_i32, %c0_i32_0 : i32, i32
  }
  func.func @transform_10(%arg0: i32, %arg1: i32) -> (i32, i32, i32, i32) {
    %c0_i32 = arith.constant 0 : i32
    %c0_i32_0 = arith.constant 0 : i32
    %c0_i32_1 = arith.constant 0 : i32
    return %arg0, %arg1, %c0_i32, %c0_i32_0 : i32, i32, i32, i32
  }
}

</mosaic_0001>

<bundles_post_ra>
// kernel: tpu_custom_call.1
= control target key start
LH: loop header
LB: loop body
LE: loop exit
PB: predicated region body
PF: predicated region fallthrough
CT: control target
= control target key end

     0   :  { %s7156_s0 = inlined_call_operand.hbm [shape: f32[2,16,16,128], index: 0, kind: input, shape index: {}]   ;;  %s7157_s1 = inlined_call_operand.vmem [shape: bf16[128,32], index: 1, kind: input, shape index: {}]   ;;  %s7158_s2 = inlined_call_operand.vmem [shape: f32[1,32], index: 2, kind: input, shape index: {}]   ;;  %s7159_s3 = inlined_call_operand.vmem [shape: f32[1,32], index: 3, kind: input, shape index: {}]   ;;  %s7160_s4 = inlined_call_operand.hbm [shape: bf16[3,3,32,32], index: 4, kind: input, shape index: {}]   ;;  %s7161_s5 = inlined_call_operand.vmem [shape: f32[1,32], index: 5, kind: input, shape index: {}]   ;;  %s7162_s6 = inlined_call_operand.vmem [shape: f32[1,32], index: 6, kind: input, shape index: {}]   ;;  %s7163_s7 = inlined_call_operand.vmem [shape: bf16[32,128], index: 7, kind: input, shape index: {}]   ;;  %s7164_s8 = inlined_call_operand.vmem [shape: f32[1,128], index: 8, kind: input, shape index: {}]   ;;  %s7165_s9 = inlined_call_operand.vmem [shape: f32[1,128], index: 9, kind: input, shape index: {}]   ;;  %s7166_s10 = inlined_call_operand.hbm [shape: f32[2,16,16,128], index: 10, kind: output, shape index: {}]  }
   0x1   :  { %7174 = sst [smem:[#allocation14_spill]] %s7160_s4 }
   0x2   :  { %7175 = sst [smem:[#allocation15_spill]] %s7166_s10 }
   0x3   :  { %15 = vsyncpa [#allocation4], 0 }
   0x4   :  { %17 = vsyncpa [#allocation4 + $0x1], 0 }
   0x5   :  { %18 = vsyncpa [#allocation7], 0 }
   0x6   :  { %19 = vsyncpa [#allocation5], 0 }
   0x7   :  { %21 = vsyncpa [#allocation5 + $0x1], 0  ;;  %s5953_s13 = smov 0   ;;  %s5955_s14 = smov 0  }
   0x8   :  { %s5957_s15 = smov 0   ;;  %s5959_s16 = smov 0  }
   0x9   :  { %s5961_s17 = smov 0   ;;  %s5963_s18 = smov 0  }
   0xa LB: > { %7176 = sst [smem:[#allocation12_spill]] %s5866_s13  ;;  %s4493_s19 = sadd.s32 4294967295, %s5886_s18   ;;  %s5886_s18 = sphi %s5963_s18, %s27_s18   ;;  %s5882_s17 = sphi %s5961_s17, %s7201_s17   ;;  %s5878_s16 = sphi %s5959_s16, %s7200_s16   ;;  %s5874_s15 = sphi %s5957_s15, %s7199_s15   ;;  %s5870_s14 = sphi %s5955_s14, %s7198_s14   ;;  %s5866_s13 = sphi %s5953_s13, %s7197_s13  }
   0xb   : > { %s4494_s20 = sadd.s32 4294967294, %s5886_s18   ;;  %p59_p0 = scmp.ne.s32.totalorder %s5870_s14, %s5866_s13 }
   0xc   : > { %p5987_p1 = scmp.eq.s32.totalorder %s4493_s19, 0  ;;  %p5991_p2 = scmp.eq.s32.totalorder %s4493_s19, 1 }
   0xd   : > { %p280_p3 = scmp.eq.s32.totalorder %s4494_s20, 1  ;;  %p4495_p5 = scmp.ge.s32.totalorder %s5886_s18, 1 }
   0xe   : > { %s7177_s21 = scalar_select %p5987_p1, 1, 0 }
   0xf   : > { %s7178_s22 = scalar_select %p5991_p2, 1, 0 }
  0x10   : > { %p5997_p4 = por %p5987_p1, %p59_p0  ;;  %p6002_p6 = por %p280_p3, %p59_p0 }
  0x11   : > { %p287_p7 = scmp.lt.s32.totalorder %s5886_s18, 3  ;;  %s5888_s26 = smov [#allocation6]  }
  0x12   : > { %s7179_s23 = scalar_select %p5997_p4, 1, 0 }
  0x13   : > { %s7180_s24 = scalar_select %p6002_p6, 1, 0 }
  0x14   : > { %p6007_p8 = pnand %p4495_p5, %p287_p7  ;;  %s308_s27 = sshll.u32 %s5888_s26, 4  ;;  %s309_s27 = int_to_ptr.vmem [resolvable:$true] %s308_s27 }
  0x15   : > { %7181 = sst [smem:[#allocation13_spill]] %s7180_s24  ;;  %s39_s29 = sadd.s32 1, %s5882_s17 }
  0x16   : > { %s7182_s25 = scalar_select %p6007_p8, 1, 0 }
  0x17   : > { %p5610_p9 = pneg %p6007_p8  ;;  %s7184_s4 = sld [smem:[#allocation14_spill]] }
  0x19   : > { %p6016_p11 = pnand %p5610_p9, %p5987_p1 }
  0x1b   : > { %p5744_p13 = pneg %p6016_p11 }
  0x1d   : > { %s5742_s12 = scalar_lea.hbm %s7184_s4, 2304 }
  0x1e   : > { %p5743_p12 = scmp.ne.s32.totalorder %s7184_s4, %s5742_s12  ;;  %p5749_p5 = scmp.lt.u32.totalorder %s5742_s12, %s7184_s4 }
  0x20   : > { %p5745_p0 = pnand %p5744_p13, %p5743_p12 }
  0x22   : > { %p5746_p3 = pneg %p5745_p0 }
  0x24   : > { %p5751_p7 = pnand %p5749_p5, %p5746_p3 }
  0x26   : > { %5754 = shalt.err (!%p5751_p7)
}
  0x27   : > { %s5755_s13 = scalar_lea.vmem %s309_s27, 2304  ;;  %p5763_p1 = scmp.lt.s32.totalorder %s309_s27, %s309_s27 }
  0x28   : > { %p5756_p9 = scmp.ne.s32.totalorder %s309_s27, %s5755_s13  ;;  %p5764_p4 = scmp.lt.s32.totalorder %s5755_s13, %s5755_s13 }
  0x2a   : > { %p5758_p10 = pnand %p5756_p9, %p5744_p13  ;;  %p5765_p8 = por %p5764_p4, %p5763_p1 }
  0x2c   : > { %p5759_p6 = pneg %p5758_p10 }
  0x2e   : > { %p5766_p2 = pnand %p5765_p8, %p5759_p6 }
  0x30   : > { %5769 = shalt.err (!%p5766_p2)
}
  0x31   : > { %s5889_s30 = smov 64   ;;  %s5890_s24 = smov 4  }
  0x32   : > { %5613 = dma.hbm_to_vmem [thread:$0]  (!%p6016_p11), %s7184_s4, 2304, %s309_s27, [#allocation7], %s5889_s30, %s5889_s30, %s5890_s24  }
  0x33   : > { %p41_p1 = scmp.ge.s32.totalorder %s39_s29, 2  ;;  %s46_s13 = sadd.s32 1, %s5874_s15 }
  0x34   : > { %p53_p2 = scmp.ne.s32.totalorder %s5874_s15, %s5870_s14  ;;  %p54_p4 = scmp.eq.s32.totalorder %s5886_s18, 0 }
  0x35   : > { %s7203_s29 = smov (%p41_p1, %s39_s29), 0  ;;  %p7186_p8 = scmp.ne.s32.totalorder %s7178_s22, 0 }
  0x36   : > { %p6043_p6 = por %p54_p4, %p53_p2  ;;  %s43_s28 = ssub.s32 %s5882_s17, %s7203_s29 }
  0x37   : > { %p6049_p10 = por %p7186_p8, %p53_p2  ;;  %p5623_p12 = scmp.lt.s32.totalorder %s5886_s18, 2 }
  0x38   : > { %p44_p11 = scmp.eq.s32.totalorder %s43_s28, 0  ;;  %s337_s27 = sand.u32 1, %s5874_s15  }
  0x39   : > { %s4498_s26 = sshll.u32 %s337_s27, 8  ;;  %s4728_s24 = sshll.u32 %s5882_s17, 12 }
  0x3a   : > { %s6058_s30 = scalar_select %p44_p11, %s5874_s15, %s46_s13  }
  0x3b   : > { %s6064_s4 = scalar_lea.hbm %s7156_s0, %s4728_s24  ;;  %s341_s22 = scalar_lea.vmem [#allocation3], %s4498_s26 }
  0x3c   : > { %s348_s10 = sshll.u32 %s341_s22, 4  ;;  %p6070_p13 = pnand %p5623_p12, %p6043_p6  ;;  %s6066_s10 = int_to_ptr.vmem [resolvable:$true] %s348_s10 }
  0x3d   : > { %s6074_s13 = scalar_lea.sflag [#allocation4], %s337_s27  ;;  %s5770_s11 = scalar_lea.hbm %s6064_s4, 4096 }
  0x3e   : > { %p5771_p0 = scmp.ne.s32.totalorder %s6064_s4, %s5770_s11  ;;  %p5772_p3 = pneg %p6070_p13 }
  0x3f   : > { %s5775_s19 = scalar_lea.hbm %s7156_s0, 8192  ;;  %p5776_p9 = scmp.lt.u32.totalorder %s6064_s4, %s7156_s0 }
  0x40   : > { %p5773_p5 = pnand %p5772_p3, %p5771_p0  ;;  %p5777_p1 = scmp.lt.u32.totalorder %s5775_s19, %s5770_s11 }
  0x41   : > { %p5779_p4 = scmp.lt.u32.totalorder %s5770_s11, %s6064_s4 }
  0x42   : > { %p5774_p7 = pneg %p5773_p5  ;;  %p5778_p2 = por %p5777_p1, %p5776_p9 }
  0x44   : > { %p5780_p6 = por %p5779_p4, %p5778_p2 }
  0x46   : > { %p5781_p8 = pnand %p5780_p6, %p5774_p7 }
  0x48   : > { %5784 = shalt.err (!%p5781_p8)
}
  0x49   : > { %s5785_s27 = scalar_lea.vmem %s6066_s10, 4096  ;;  %s5891_s26 = smov [#allocation3]  }
  0x4a   : > { %p5786_p12 = scmp.ne.s32.totalorder %s6066_s10, %s5785_s27  ;;  %s5790_s24 = sshll.u32 %s5891_s26, 4  ;;  %s5791_s24 = int_to_ptr.vmem [resolvable:$false] %s5790_s24 }
  0x4b   : > { %s5792_s12 = scalar_lea.vmem %s5791_s24, 8192  ;;  %p5793_p5 = scmp.lt.s32.totalorder %s6066_s10, %s5791_s24 }
  0x4c   : > { %p5788_p11 = pnand %p5786_p12, %p5772_p3  ;;  %p5794_p9 = scmp.lt.s32.totalorder %s5792_s12, %s5785_s27 }
  0x4e   : > { %p5789_p0 = pneg %p5788_p11  ;;  %p5795_p1 = por %p5794_p9, %p5793_p5 }
  0x50   : > { %p5796_p2 = pnand %p5795_p1, %p5789_p0 }
  0x52   : > { %5799 = shalt.err (!%p5796_p2)
}
  0x53   : > { %s5892_s11 = smov 128   ;;  %s5893_s19 = smov 8  }
  0x54   : > { %5617 = dma.hbm_to_vmem [thread:$0]  (!%p6070_p13), %s6064_s4, 4096, %s6066_s10, %s6074_s13, %s5892_s11, %s5892_s11, %s5893_s19  }
  0x55   : > { %p7189_p3 = scmp.ne.s32.totalorder %s7182_s25, 0 }
  0x56   : > { %s6105_s22 = sand.u32 (!%p7189_p3), 1, %s5870_s14   ;;  %p7190_p7 = scmp.ne.s32.totalorder (!%p7189_p3), %s7179_s23, 0 }
  0x57   : > { %360 = sbr.rel (%p7189_p3) target bundleno = 1204 (0x4b4), region = 60  ;;  %s4502_s27 = sshll.u32 (!%p7189_p3), %s6105_s22, 8 }
  0x58   : > { %s363_s26 = scalar_lea.sflag (!%p7189_p3), [#allocation4], %s6105_s22  ;;  %s6111_s24 = scalar_lea.vmem (!%p7189_p3), [#allocation3], %s4502_s27 }
  0x5e   : > { %5853 = dma.done.wait (%p7190_p7), %s363_s26, 4096  }
  0x5f   : > { %5855 = vsyncadd (%p7190_p7), %s363_s26, 4294963200  ;;  %p7191_p13 = scmp.ne.s32.totalorder %s7177_s21, 0 }
  0x61   : > { %5857 = dma.done.wait (%p7191_p13), [#allocation7], 2304  }
  0x62   : > { %5859 = vsyncadd (%p7191_p13), [#allocation7], 4294964992  ;;  %vm410_vm0 = vcmask 261120   ;;  %v5894_v0 = vmov 0.0   ;;  %v5682_v1 = vld [vmem:[%s7157_s1] sm:$0xff]   ;;  %v5683_v2 = vld [vmem:[%s7157_s1 + $0x8] sm:$0xff]  }
  0x63   : > { %418 = vst.msk [vmem:[#allocation2 + $0x30] sm:$0xff] %vm410_vm0, %v5894_v0  ;;  %419 = vst.msk [vmem:[#allocation2 + $0x38] sm:$0xff] %vm410_vm0, %v5894_v0  ;;  %4934 = vmatprep.subr.bf16.mxu0 %v5682_v1  ;;  %v5684_v3 = vld [vmem:[%s7157_s1 + $0x10] sm:$0xff]   ;;  %v5685_v4 = vld [vmem:[%s7157_s1 + $0x18] sm:$0xff]   ;;  %vm413_vm1 = vcmask 254976   ;;  %s6982_s26 = scalar_lea.vmem [#allocation8], %s4502_s27 }
  0x64   : > { %411 = vst.msk [vmem:[#allocation2] sm:$0xff] %vm410_vm0, %v5894_v0  ;;  %412 = vst.msk [vmem:[#allocation2 + $0x8] sm:$0xff] %vm410_vm0, %v5894_v0  ;;  %4935 = vmatpush3.bf16.msra.mxu0 %v5682_v1  ;;  %v468_v5 = vld [vmem:[%s6111_s24] sm:$0xff]  ;;  %v469_v6 = vld [vmem:[%s6111_s24 + $0x8] sm:$0xff]  ;;  %s4729_s27 = sshll.u32 %s5878_s16, 12  ;;  %s4391_s4 = sshll.u32 %s6982_s26, 4  ;;  %s7104_s4 = int_to_ptr.vmem [resolvable:$true] %s4391_s4 }
  0x65   : > { %415 = vst.msk [vmem:[#allocation2 + $0x18] sm:$0xff] %vm410_vm0, %v5894_v0  ;;  %416 = vst.msk [vmem:[#allocation2 + $0x20] sm:$0xff] %vm410_vm0, %v5894_v0  ;;  %4936 = vmatprep.subr.bf16.mxu0 %v5683_v2  ;;  %v500_v7 = vpack.c.bf16 %v469_v6, %v468_v5  ;;  %v5686_v8 = vld [vmem:[%s7157_s1 + $0x20] sm:$0xff]   ;;  %v5687_v9 = vld [vmem:[%s7157_s1 + $0x28] sm:$0xff]   ;;  %s7192_s23 = sld [smem:[#allocation15_spill]]  ;;  %s4375_s16 = scalar_lea.sflag [#allocation5], %s6105_s22 }
  0x66   : > { %421 = vst.msk [vmem:[#allocation2 + $0x48] sm:$0xff] %vm410_vm0, %v5894_v0  ;;  %422 = vst.msk [vmem:[#allocation2 + $0x50] sm:$0xff] %vm410_vm0, %v5894_v0  ;;  %v5688_v10 = vld [vmem:[%s7157_s1 + $0x30] sm:$0xff]   ;;  %v5689_v11 = vld [vmem:[%s7157_s1 + $0x38] sm:$0xff]   ;;  %s5800_s28 = scalar_lea.vmem %s7104_s4, 4096 }
  0x67   : > { %424 = vst.msk [vmem:[#allocation2 + $0x60] sm:$0xff] %vm410_vm0, %v5894_v0  ;;  %425 = vst.msk [vmem:[#allocation2 + $0x68] sm:$0xff] %vm410_vm0, %v5894_v0  ;;  %4950 = vmatprep.mubr.bf16.mxu0 %v500_v7  ;;  %v470_v12 = vld [vmem:[%s6111_s24 + $0x10] sm:$0xff]  ;;  %v471_v13 = vld [vmem:[%s6111_s24 + $0x18] sm:$0xff]  ;;  %p5801_p4 = scmp.ne.s32.totalorder %s7104_s4, %s5800_s28 }
  0x68   : > { %427 = vst.msk [vmem:[#allocation2 + $0x78] sm:$0xff] %vm410_vm0, %v5894_v0  ;;  %428 = vst.msk [vmem:[#allocation2 + $0x80] sm:$0xff] %vm410_vm0, %v5894_v0  ;;  %4937 = vmatpush3.bf16.msra.mxu0 %v5683_v2  ;;  %v472_v14 = vld [vmem:[%s6111_s24 + $0x20] sm:$0xff]  ;;  %v473_v15 = vld [vmem:[%s6111_s24 + $0x28] sm:$0xff]  ;;  %v501_v16 = vpack.c.bf16 %v471_v13, %v470_v12 }
  0x69   : > { %430 = vst.msk [vmem:[#allocation2 + $0x90] sm:$0xff] %vm410_vm0, %v5894_v0  ;;  %431 = vst.msk [vmem:[#allocation2 + $0x98] sm:$0xff] %vm410_vm0, %v5894_v0  ;;  %4938 = vmatprep.subr.bf16.mxu0 %v5684_v3  ;;  %v502_v17 = vpack.c.bf16 %v473_v15, %v472_v14  ;;  %v474_v18 = vld [vmem:[%s6111_s24 + $0x30] sm:$0xff]  ;;  %v475_v19 = vld [vmem:[%s6111_s24 + $0x38] sm:$0xff]  ;;  %p5802_p6 = pnand %p5801_p4, %p6049_p10 }
  0x6a   : > { %433 = vst.msk [vmem:[#allocation2 + $0xa8] sm:$0xff] %vm410_vm0, %v5894_v0  ;;  %434 = vst.msk [vmem:[#allocation2 + $0xb0] sm:$0xff] %vm410_vm0, %v5894_v0  ;;  %v476_v20 = vld [vmem:[%s6111_s24 + $0x40] sm:$0xff]  ;;  %v477_v21 = vld [vmem:[%s6111_s24 + $0x48] sm:$0xff]  ;;  %v503_v22 = vpack.c.bf16 %v475_v19, %v474_v18 }
  0x6b   : > { %436 = vst.msk [vmem:[#allocation2 + $0xc0] sm:$0xff] %vm410_vm0, %v5894_v0  ;;  %437 = vst.msk [vmem:[#allocation2 + $0xc8] sm:$0xff] %vm410_vm0, %v5894_v0  ;;  %v504_v23 = vpack.c.bf16 %v477_v21, %v476_v20  ;;  %v478_v24 = vld [vmem:[%s6111_s24 + $0x50] sm:$0xff]  ;;  %v479_v25 = vld [vmem:[%s6111_s24 + $0x58] sm:$0xff]  ;;  %s7102_s25 = scalar_lea.hbm %s7192_s23, %s4729_s27  ;;  %p5803_p8 = pneg %p5802_p6 }
  0x6c   : > { %439 = vst.msk [vmem:[#allocation2 + $0xd8] sm:$0xff] %vm410_vm0, %v5894_v0  ;;  %440 = vst.msk [vmem:[#allocation2 + $0xe0] sm:$0xff] %vm410_vm0, %v5894_v0  ;;  %4939 = vmatpush3.bf16.msra.mxu0 %v5684_v3  ;;  %v480_v26 = vld [vmem:[%s6111_s24 + $0x60] sm:$0xff]  ;;  %v481_v27 = vld [vmem:[%s6111_s24 + $0x68] sm:$0xff]  ;;  %v505_v28 = vpack.c.bf16 %v479_v25, %v478_v24 }
  0x6d   : > { %442 = vst.msk [vmem:[#allocation2 + $0xf0] sm:$0xff] %vm410_vm0, %v5894_v0  ;;  %443 = vst.msk [vmem:[#allocation2 + $0xf8] sm:$0xff] %vm410_vm0, %v5894_v0  ;;  %4940 = vmatprep.subr.bf16.mxu0 %v5685_v4  ;;  %v506_v29 = vpack.c.bf16 %v481_v27, %v480_v26  ;;  %v482_v30 = vld [vmem:[%s6111_s24 + $0x70] sm:$0xff]  ;;  %v483_v31 = vld [vmem:[%s6111_s24 + $0x78] sm:$0xff] }
  0x6e   : > { %445 = vst.msk [vmem:[#allocation2 + $0x108] sm:$0xff] %vm410_vm0, %v5894_v0  ;;  %446 = vst.msk [vmem:[#allocation2 + $0x110] sm:$0xff] %vm410_vm0, %v5894_v0  ;;  %v484_v32 = vld [vmem:[%s6111_s24 + $0x80] sm:$0xff]  ;;  %v485_v33 = vld [vmem:[%s6111_s24 + $0x88] sm:$0xff]  ;;  %v507_v34 = vpack.c.bf16 %v483_v31, %v482_v30 }
  0x6f   : > { %448 = vst.msk [vmem:[#allocation2 + $0x120] sm:$0xff] %vm410_vm0, %v5894_v0  ;;  %449 = vst.msk [vmem:[#allocation2 + $0x128] sm:$0xff] %vm410_vm0, %v5894_v0  ;;  %v508_v35 = vpack.c.bf16 %v485_v33, %v484_v32  ;;  %v486_v36 = vld [vmem:[%s6111_s24 + $0x90] sm:$0xff]  ;;  %v487_v37 = vld [vmem:[%s6111_s24 + $0x98] sm:$0xff] }
  0x70   : > { %451 = vst.msk [vmem:[#allocation2 + $0x138] sm:$0xff] %vm410_vm0, %v5894_v0  ;;  %452 = vst.msk [vmem:[#allocation2 + $0x140] sm:$0xff] %vm410_vm0, %v5894_v0  ;;  %4941 = vmatpush3.bf16.msra.mxu0 %v5685_v4  ;;  %v488_v38 = vld [vmem:[%s6111_s24 + $0xa0] sm:$0xff]  ;;  %v489_v39 = vld [vmem:[%s6111_s24 + $0xa8] sm:$0xff]  ;;  %v509_v40 = vpack.c.bf16 %v487_v37, %v486_v36 }
  0x71   : > { %454 = vst.msk [vmem:[#allocation2 + $0x150] sm:$0xff] %vm410_vm0, %v5894_v0  ;;  %455 = vst.msk [vmem:[#allocation2 + $0x158] sm:$0xff] %vm410_vm0, %v5894_v0  ;;  %4942 = vmatprep.subr.bf16.mxu0 %v5686_v8  ;;  %v510_v41 = vpack.c.bf16 %v489_v39, %v488_v38  ;;  %v490_v42 = vld [vmem:[%s6111_s24 + $0xb0] sm:$0xff]  ;;  %v491_v43 = vld [vmem:[%s6111_s24 + $0xb8] sm:$0xff] }
  0x72   : > { %457 = vst.msk [vmem:[#allocation2 + $0x168] sm:$0xff] %vm410_vm0, %v5894_v0  ;;  %458 = vst.msk [vmem:[#allocation2 + $0x170] sm:$0xff] %vm410_vm0, %v5894_v0  ;;  %v492_v44 = vld [vmem:[%s6111_s24 + $0xc0] sm:$0xff]  ;;  %v493_v45 = vld [vmem:[%s6111_s24 + $0xc8] sm:$0xff]  ;;  %v511_v46 = vpack.c.bf16 %v491_v43, %v490_v42 }
  0x73   : > { %460 = vst.msk [vmem:[#allocation2 + $0x180] sm:$0xff] %vm410_vm0, %v5894_v0  ;;  %461 = vst.msk [vmem:[#allocation2 + $0x188] sm:$0xff] %vm410_vm0, %v5894_v0  ;;  %v512_v47 = vpack.c.bf16 %v493_v45, %v492_v44  ;;  %v494_v48 = vld [vmem:[%s6111_s24 + $0xd0] sm:$0xff]  ;;  %v495_v49 = vld [vmem:[%s6111_s24 + $0xd8] sm:$0xff] }
  0x74   : > { %463 = vst.msk [vmem:[#allocation2 + $0x198] sm:$0xff] %vm410_vm0, %v5894_v0  ;;  %464 = vst.msk [vmem:[#allocation2 + $0x1a0] sm:$0xff] %vm410_vm0, %v5894_v0  ;;  %4943 = vmatpush3.bf16.msra.mxu0 %v5686_v8  ;;  %v496_v50 = vld [vmem:[%s6111_s24 + $0xe0] sm:$0xff]  ;;  %v497_v51 = vld [vmem:[%s6111_s24 + $0xe8] sm:$0xff]  ;;  %v513_v52 = vpack.c.bf16 %v495_v49, %v494_v48 }
  0x75   : > { %4944 = vmatprep.subr.bf16.mxu0 %v5687_v9  ;;  %v514_v53 = vpack.c.bf16 %v497_v51, %v496_v50  ;;  %v498_v54 = vld [vmem:[%s6111_s24 + $0xf0] sm:$0xff]  ;;  %v499_v55 = vld [vmem:[%s6111_s24 + $0xf8] sm:$0xff]  ;;  %420 = vst.msk [vmem:[#allocation2 + $0x40] sm:$0x3] %vm413_vm1, %v5894_v0  ;;  %414 = vst.msk [vmem:[#allocation2 + $0x10] sm:$0x3] %vm413_vm1, %v5894_v0 }
  0x76   : > { %v515_v56 = vpack.c.bf16 %v499_v55, %v498_v54  ;;  %417 = vst.msk [vmem:[#allocation2 + $0x28] sm:$0x3] %vm413_vm1, %v5894_v0  ;;  %423 = vst.msk [vmem:[#allocation2 + $0x58] sm:$0x3] %vm413_vm1, %v5894_v0  ;;  %v5690_v57 = vld [vmem:[#allocation6 + $0x10] sm:$0xff]   ;;  %v5691_v58 = vld [vmem:[#allocation6 + $0x18] sm:$0xff]  }
  0x77   : > { %426 = vst.msk [vmem:[#allocation2 + $0x70] sm:$0x3] %vm413_vm1, %v5894_v0  ;;  %429 = vst.msk [vmem:[#allocation2 + $0x88] sm:$0x3] %vm413_vm1, %v5894_v0  ;;  %v1211_v59 = vld [vmem:[#allocation2 + $0x1] sm:$0xff]  ;;  %v6297_v1 = vld [vmem:[#allocation6] sm:$0xff]  }
  0x78   : > { %4945 = vmatpush3.bf16.msra.mxu0 %v5687_v9  ;;  %432 = vst.msk [vmem:[#allocation2 + $0xa0] sm:$0x3] %vm413_vm1, %v5894_v0  ;;  %435 = vst.msk [vmem:[#allocation2 + $0xb8] sm:$0x3] %vm413_vm1, %v5894_v0  ;;  %v6286_v62 = vld [vmem:[#allocation6 + $0x30] sm:$0xff]   ;;  %v6290_v63 = vld [vmem:[#allocation6 + $0x38] sm:$0xff]  }
  0x79   : > { %4946 = vmatprep.subr.bf16.mxu0 %v5688_v10  ;;  %438 = vst.msk [vmem:[#allocation2 + $0xd0] sm:$0x3] %vm413_vm1, %v5894_v0  ;;  %441 = vst.msk [vmem:[#allocation2 + $0xe8] sm:$0x3] %vm413_vm1, %v5894_v0  ;;  %5342 = vmatprep.subr.bf16.mxu1 %v6286_v62  ;;  %v6303_v2 = vld [vmem:[%s7158_s2] ss:$0 sm:$0xff] }
  0x7a   : > { %444 = vst.msk [vmem:[#allocation2 + $0x100] sm:$0x3] %vm413_vm1, %v5894_v0  ;;  %447 = vst.msk [vmem:[#allocation2 + $0x118] sm:$0x3] %vm413_vm1, %v5894_v0  ;;  %5344 = vmatpush3.bf16.msra.mxu1 %v6286_v62  ;;  %v6308_v4 = vld [vmem:[%s7159_s3] ss:$0 sm:$0xff] }
  0x7b   : > { %450 = vst.msk [vmem:[#allocation2 + $0x130] sm:$0x3] %vm413_vm1, %v5894_v0  ;;  %453 = vst.msk [vmem:[#allocation2 + $0x148] sm:$0x3] %vm413_vm1, %v5894_v0  ;;  %5343 = vmatprep.subr.bf16.mxu1 %v6290_v63 }
  0x7c   : > { %4947 = vmatpush3.bf16.msra.mxu0 %v5688_v10  ;;  %456 = vst.msk [vmem:[#allocation2 + $0x160] sm:$0x3] %vm413_vm1, %v5894_v0  ;;  %459 = vst.msk [vmem:[#allocation2 + $0x178] sm:$0x3] %vm413_vm1, %v5894_v0  ;;  %v1212_v60 = vld [vmem:[#allocation2 + $0x9] sm:$0xff] }
  0x7d   : > { %4948 = vmatprep.subr.bf16.mxu0 %v5689_v11  ;;  %462 = vst.msk [vmem:[#allocation2 + $0x190] sm:$0x3] %vm413_vm1, %v5894_v0  ;;  %465 = vst.msk [vmem:[#allocation2 + $0x1a8] sm:$0x3] %vm413_vm1, %v5894_v0  ;;  %v1243_v61 = vpack.c.bf16 %v1212_v60, %v1211_v59  ;;  %v6294_v0 = vld [vmem:[#allocation6 + $0x40] sm:$0xff]  }
  0x7e   : > { %5345 = vmatpush3.bf16.msra.mxu1 %v6290_v63 }
  0x7f   : > { %5126 = vmatprep.subr.bf16.mxu1 %v6294_v0 }
  0x80   : > { %4949 = vmatpush3.bf16.msra.mxu0 %v5689_v11 }
  0x81   : > { %4982 = vmatprep.subr.bf16.mxu0 %v5690_v57 }
  0x83   : > { %4951 = vmatmul.mubr.bf16.vlgmr.msra.gmra.mrb[0].mxu0 %v501_v16 }
  0x84   : > { %4954 = vmatprep.mubr.bf16.mxu0 %v502_v17  ;;  %4983 = vmatpush3.bf16.msra.mxu0 %v5690_v57  ;;  %v6351_v57 = vld [vmem:[#allocation6 + $0x20] sm:$0xff]  }
  0x85   : > { %4984 = vmatprep.subr.bf16.mxu0 %v5691_v58 }
  0x88   : > { %4985 = vmatpush3.bf16.msra.mxu0 %v5691_v58 }
  0x89   : > { %5018 = vmatprep.subr.bf16.mxu0 %v6297_v1 }
  0x8b   : > { %4955 = vmatmul.mubr.bf16.gmra.mrb[4].mxu0 %v503_v22 }
  0x8c   : > { %4958 = vmatprep.mubr.bf16.mxu0 %v504_v23 }
  0x93   : > { %4959 = vmatmul.mubr.bf16.gmra.mrb[8].mxu0 %v505_v28 }
  0x94   : > { %4962 = vmatprep.mubr.bf16.mxu0 %v506_v29 }
  0x9b   : > { %4963 = vmatmul.mubr.bf16.gmra.mrb[12].mxu0 %v507_v34 }
  0x9c   : > { %4966 = vmatprep.mubr.bf16.mxu0 %v508_v35 }
  0xa3   : > { %4967 = vmatmul.mubr.bf16.gmra.mrb[16].mxu0 %v509_v40 }
  0xa4   : > { %4970 = vmatprep.mubr.bf16.mxu0 %v510_v41 }
  0xab   : > { %4971 = vmatmul.mubr.bf16.gmra.mrb[20].mxu0 %v511_v46  ;;  %v5697_v46 = vld [vmem:[#allocation6 + $0x8] sm:$0xff]  }
  0xac   : > { %4974 = vmatprep.mubr.bf16.mxu0 %v512_v47 }
  0xb3   : > { %4975 = vmatmul.mubr.bf16.gmra.mrb[24].mxu0 %v513_v52 }
  0xb4   : > { %4978 = vmatprep.mubr.bf16.mxu0 %v514_v53 }
  0xbb   : > { %4979 = vmatmul.mubr.bf16.gmra.mrb[28].mxu0 %v515_v56 }
  0xbc   : > { %4986 = vmatprep.mubr.msk.bf16.mxu0 %vm410_vm0, %v1243_v61 }
 0x156   : > { %v4952_v3 = vpop.f32.mrb[0].mxu0 }
 0x157   : > { %v750_v5 = vmul.f32 %v4952_v3, %v6303_v2  ;;  %v614_v6 = vpop.f32.mrb[1].mxu0 }
 0x158   : > { %v748_v7 = vmul.f32 %v6303_v2, %v614_v6  ;;  %v4953_v8 = vpop.f32.mrb[2].mxu0 }
 0x159   : > { %v789_v9 = vadd.f32 %v6308_v4, %v750_v5  ;;  %v751_v10 = vmul.f32 %v4953_v8, %v6303_v2  ;;  %v617_v11 = vpop.f32.mrb[3].mxu0 }
 0x15a   : > { %v787_v12 = vadd.f32 %v6308_v4, %v748_v7  ;;  %v749_v13 = vmul.f32 %v6303_v2, %v617_v11 }
 0x15b   : > { %v821_v14 = vmax.f32 %v789_v9, 0.0  ;;  %v790_v15 = vadd.f32 %v6308_v4, %v751_v10 }
 0x15c   : > { %v819_v16 = vmax.f32 %v787_v12, 0.0  ;;  %v788_v17 = vadd.f32 %v6308_v4, %v749_v13 }
 0x15d   : > { %854 = vst.msk [vmem:[#allocation2 + $0x31] sm:$0xff] %vm410_vm0, %v821_v14  ;;  %v822_v18 = vmax.f32 %v790_v15, 0.0 }
 0x15e   : > { %852 = vst.msk [vmem:[#allocation2 + $0x19] sm:$0xff] %vm410_vm0, %v819_v16  ;;  %v820_v19 = vmax.f32 %v788_v17, 0.0  ;;  %v4956_v20 = vpop.f32.mrb[4].mxu0 }
 0x15f   : > { %855 = vst.msk [vmem:[#allocation2 + $0x39] sm:$0xff] %vm410_vm0, %v822_v18  ;;  %v754_v21 = vmul.f32 %v4956_v20, %v6303_v2  ;;  %v630_v22 = vpop.f32.mrb[5].mxu0 }
 0x160   : > { %853 = vst.msk [vmem:[#allocation2 + $0x21] sm:$0xff] %vm410_vm0, %v820_v19  ;;  %v752_v23 = vmul.f32 %v6303_v2, %v630_v22  ;;  %v4957_v24 = vpop.f32.mrb[6].mxu0 }
 0x161   : > { %v793_v25 = vadd.f32 %v6308_v4, %v754_v21  ;;  %v755_v26 = vmul.f32 %v4957_v24, %v6303_v2  ;;  %v633_v27 = vpop.f32.mrb[7].mxu0 }
 0x162   : > { %v791_v28 = vadd.f32 %v6308_v4, %v752_v23  ;;  %v753_v29 = vmul.f32 %v6303_v2, %v633_v27 }
 0x163   : > { %v825_v30 = vmax.f32 %v793_v25, 0.0  ;;  %v794_v31 = vadd.f32 %v6308_v4, %v755_v26 }
 0x164   : > { %v823_v32 = vmax.f32 %v791_v28, 0.0  ;;  %v792_v33 = vadd.f32 %v6308_v4, %v753_v29  ;;  %v1215_v45 = vld [vmem:[#allocation2 + $0x31] sm:$0xff] }
 0x165   : > { %858 = vst.msk [vmem:[#allocation2 + $0x61] sm:$0xff] %vm410_vm0, %v825_v30  ;;  %v826_v34 = vmax.f32 %v794_v31, 0.0  ;;  %v1213_v40 = vld [vmem:[#allocation2 + $0x19] sm:$0xff] }
 0x166   : > { %856 = vst.msk [vmem:[#allocation2 + $0x49] sm:$0xff] %vm410_vm0, %v823_v32  ;;  %v824_v35 = vmax.f32 %v792_v33, 0.0  ;;  %v4960_v36 = vpop.f32.mrb[8].mxu0  ;;  %v1216_v37 = vld [vmem:[#allocation2 + $0x39] sm:$0xff] }
 0x167   : > { %859 = vst.msk [vmem:[#allocation2 + $0x69] sm:$0xff] %vm410_vm0, %v826_v34  ;;  %v758_v38 = vmul.f32 %v4960_v36, %v6303_v2  ;;  %v646_v39 = vpop.f32.mrb[9].mxu0  ;;  %v1214_v41 = vld [vmem:[#allocation2 + $0x21] sm:$0xff]  ;;  %v6340_v50 = vpack.c.bf16 %v1216_v37, %v1215_v45 }
 0x168   : > { %857 = vst.msk [vmem:[#allocation2 + $0x51] sm:$0xff] %vm410_vm0, %v824_v35  ;;  %v756_v42 = vmul.f32 %v6303_v2, %v646_v39  ;;  %v4961_v43 = vpop.f32.mrb[10].mxu0  ;;  %v6336_v44 = vpack.c.bf16 %v1214_v41, %v1213_v40 }
 0x169   : > { %v797_v47 = vadd.f32 %v6308_v4, %v758_v38  ;;  %v759_v48 = vmul.f32 %v4961_v43, %v6303_v2  ;;  %v649_v49 = vpop.f32.mrb[11].mxu0  ;;  %v5695_v43 = vld [vmem:[#allocation6 + $0x48] sm:$0xff]  }
 0x16a   : > { %v795_v51 = vadd.f32 %v6308_v4, %v756_v42  ;;  %v757_v52 = vmul.f32 %v6303_v2, %v649_v49  ;;  %4987 = vmatmul.mubr.msk.bf16.vlgmr.msra.gmra.mrb[32].mxu0 %vm410_vm0, %v6336_v44 }
 0x16b   : > { %v829_v53 = vmax.f32 %v797_v47, 0.0  ;;  %v798_v54 = vadd.f32 %v6308_v4, %v759_v48  ;;  %4990 = vmatprep.mubr.msk.bf16.mxu0 %vm410_vm0, %v6340_v50  ;;  %5019 = vmatpush3.bf16.msra.mxu0 %v6297_v1 }
 0x16c   : > { %v827_v55 = vmax.f32 %v795_v51, 0.0  ;;  %v796_v56 = vadd.f32 %v6308_v4, %v757_v52  ;;  %5020 = vmatprep.subr.bf16.mxu0 %v5697_v46  ;;  %v1219_v10 = vld [vmem:[#allocation2 + $0x61] sm:$0xff] }
 0x16d   : > { %862 = vst.msk [vmem:[#allocation2 + $0x91] sm:$0xff] %vm410_vm0, %v829_v53  ;;  %v830_v58 = vmax.f32 %v798_v54, 0.0  ;;  %v1217_v1 = vld [vmem:[#allocation2 + $0x49] sm:$0xff]  ;;  %v6404_v53 = vld [vmem:[#allocation6 + $0x50] sm:$0xff]  }
 0x16e   : > { %860 = vst.msk [vmem:[#allocation2 + $0x79] sm:$0xff] %vm410_vm0, %v827_v55  ;;  %v828_v59 = vmax.f32 %v796_v56, 0.0  ;;  %v4964_v60 = vpop.f32.mrb[12].mxu0  ;;  %v1220_v61 = vld [vmem:[#allocation2 + $0x69] sm:$0xff] }
 0x16f   : > { %863 = vst.msk [vmem:[#allocation2 + $0x99] sm:$0xff] %vm410_vm0, %v830_v58  ;;  %v762_v3 = vmul.f32 %v4964_v60, %v6303_v2  ;;  %v662_v5 = vpop.f32.mrb[13].mxu0  ;;  %v1218_v6 = vld [vmem:[#allocation2 + $0x51] sm:$0xff]  ;;  %5021 = vmatpush3.bf16.msra.mxu0 %v5697_v46  ;;  %v6364_v14 = vpack.c.bf16 %v1220_v61, %v1219_v10 }
 0x170   : > { %861 = vst.msk [vmem:[#allocation2 + $0x81] sm:$0xff] %vm410_vm0, %v828_v59  ;;  %v760_v7 = vmul.f32 %v6303_v2, %v662_v5  ;;  %v4965_v8 = vpop.f32.mrb[14].mxu0  ;;  %v6359_v9 = vpack.c.bf16 %v1218_v6, %v1217_v1  ;;  %5054 = vmatprep.subr.bf16.mxu0 %v6351_v57 }
 0x171   : > { %v801_v11 = vadd.f32 %v6308_v4, %v762_v3  ;;  %v763_v12 = vmul.f32 %v4965_v8, %v6303_v2  ;;  %v665_v13 = vpop.f32.mrb[15].mxu0 }
 0x172   : > { %v799_v15 = vadd.f32 %v6308_v4, %v760_v7  ;;  %v761_v16 = vmul.f32 %v6303_v2, %v665_v13  ;;  %4991 = vmatmul.mubr.msk.bf16.gmra.mrb[36].mxu0 %vm410_vm0, %v6359_v9 }
 0x173   : > { %v833_v17 = vmax.f32 %v801_v11, 0.0  ;;  %v802_v18 = vadd.f32 %v6308_v4, %v763_v12  ;;  %4994 = vmatprep.mubr.msk.bf16.mxu0 %vm410_vm0, %v6364_v14 }
 0x174   : > { %v831_v19 = vmax.f32 %v799_v15, 0.0  ;;  %v800_v20 = vadd.f32 %v6308_v4, %v761_v16  ;;  %v1223_v36 = vld [vmem:[#allocation2 + $0x91] sm:$0xff] }
 0x175   : > { %866 = vst.msk [vmem:[#allocation2 + $0xc1] sm:$0xff] %vm410_vm0, %v833_v17  ;;  %v834_v21 = vmax.f32 %v802_v18, 0.0  ;;  %v1221_v24 = vld [vmem:[#allocation2 + $0x79] sm:$0xff]  ;;  %v2022_v37 = vld [vmem:[#allocation2 + $0x90] sm:$0xff] }
 0x176   : > { %864 = vst.msk [vmem:[#allocation2 + $0xa9] sm:$0xff] %vm410_vm0, %v831_v19  ;;  %v832_v22 = vmax.f32 %v800_v20, 0.0  ;;  %v4968_v23 = vpop.f32.mrb[16].mxu0  ;;  %v1224_v25 = vld [vmem:[#allocation2 + $0x99] sm:$0xff] }
 0x177   : > { %v2023_v26 = vld [vmem:[#allocation2 + $0x98] sm:$0xff]  ;;  %867 = vst.msk [vmem:[#allocation2 + $0xc9] sm:$0xff] %vm410_vm0, %v834_v21  ;;  %v766_v27 = vmul.f32 %v4968_v23, %v6303_v2  ;;  %v678_v28 = vpop.f32.mrb[17].mxu0  ;;  %v1222_v29 = vld [vmem:[#allocation2 + $0x81] sm:$0xff]  ;;  %v6386_v41 = vpack.c.bf16 %v1224_v25, %v1223_v36 }
 0x178   : > { %v2020_v30 = vld [vmem:[#allocation2 + $0x78] sm:$0xff]  ;;  %v2021_v31 = vld [vmem:[#allocation2 + $0x80] sm:$0xff]  ;;  %865 = vst.msk [vmem:[#allocation2 + $0xb1] sm:$0xff] %vm410_vm0, %v832_v22  ;;  %v764_v32 = vmul.f32 %v6303_v2, %v678_v28  ;;  %v4969_v33 = vpop.f32.mrb[18].mxu0  ;;  %v6380_v34 = vpack.c.bf16 %v1222_v29, %v1221_v24  ;;  %v6388_v42 = vpack.c.bf16 %v2023_v26, %v2022_v37 }
 0x179   : > { %v6382_v35 = vpack.c.bf16 %v2021_v31, %v2020_v30  ;;  %v805_v38 = vadd.f32 %v6308_v4, %v766_v27  ;;  %v767_v39 = vmul.f32 %v4969_v33, %v6303_v2  ;;  %v681_v40 = vpop.f32.mrb[19].mxu0 }
 0x17a   : > { %v803_v45 = vadd.f32 %v6308_v4, %v764_v32  ;;  %v765_v46 = vmul.f32 %v6303_v2, %v681_v40  ;;  %4995 = vmatmul.mubr.msk.bf16.gmra.mrb[40].mxu0 %vm410_vm0, %v6380_v34 }
 0x17b   : > { %5102 = vmatprep.mubr.msk.bf16.mxu1 %vm410_vm0, %v6382_v35  ;;  %v837_v47 = vmax.f32 %v805_v38, 0.0  ;;  %v806_v48 = vadd.f32 %v6308_v4, %v767_v39  ;;  %4998 = vmatprep.mubr.msk.bf16.mxu0 %vm410_vm0, %v6386_v41 }
 0x17c   : > { %5103 = vmatmul.mubr.msk.bf16.vlgmr.msra.gmra.mrb[0].mxu1 %vm410_vm0, %v6388_v42  ;;  %v835_v49 = vmax.f32 %v803_v45, 0.0  ;;  %v804_v51 = vadd.f32 %v6308_v4, %v765_v46  ;;  %v1227_v10 = vld [vmem:[#allocation2 + $0xc1] sm:$0xff] }
 0x17d   : > { %5127 = vmatpush3.bf16.msra.mxu1 %v6294_v0  ;;  %870 = vst.msk [vmem:[#allocation2 + $0xf1] sm:$0xff] %vm410_vm0, %v837_v47  ;;  %v838_v52 = vmax.f32 %v806_v48, 0.0  ;;  %v1225_v56 = vld [vmem:[#allocation2 + $0xa9] sm:$0xff]  ;;  %v2026_v11 = vld [vmem:[#allocation2 + $0xc0] sm:$0xff] }
 0x17e   : > { %5128 = vmatprep.subr.bf16.mxu1 %v5695_v43  ;;  %868 = vst.msk [vmem:[#allocation2 + $0xd9] sm:$0xff] %vm410_vm0, %v835_v49  ;;  %v836_v54 = vmax.f32 %v804_v51, 0.0  ;;  %v4972_v55 = vpop.f32.mrb[20].mxu0  ;;  %v1228_v58 = vld [vmem:[#allocation2 + $0xc9] sm:$0xff] }
 0x17f   : > { %v2027_v59 = vld [vmem:[#allocation2 + $0xc8] sm:$0xff]  ;;  %871 = vst.msk [vmem:[#allocation2 + $0xf9] sm:$0xff] %vm410_vm0, %v838_v52  ;;  %v770_v60 = vmul.f32 %v4972_v55, %v6303_v2  ;;  %v694_v61 = vpop.f32.mrb[21].mxu0  ;;  %v1226_v3 = vld [vmem:[#allocation2 + $0xb1] sm:$0xff]  ;;  %v6417_v16 = vpack.c.bf16 %v1228_v58, %v1227_v10 }
 0x180   : > { %v2024_v0 = vld [vmem:[#allocation2 + $0xa8] sm:$0xff]  ;;  %v2025_v5 = vld [vmem:[#allocation2 + $0xb0] sm:$0xff]  ;;  %869 = vst.msk [vmem:[#allocation2 + $0xe1] sm:$0xff] %vm410_vm0, %v836_v54  ;;  %v768_v1 = vmul.f32 %v6303_v2, %v694_v61  ;;  %v4973_v6 = vpop.f32.mrb[22].mxu0  ;;  %v6411_v7 = vpack.c.bf16 %v1226_v3, %v1225_v56  ;;  %v6419_v17 = vpack.c.bf16 %v2027_v59, %v2026_v11 }
 0x181   : > { %v6413_v8 = vpack.c.bf16 %v2025_v5, %v2024_v0  ;;  %5129 = vmatpush3.bf16.msra.mxu1 %v5695_v43  ;;  %v809_v12 = vadd.f32 %v6308_v4, %v770_v60  ;;  %v771_v13 = vmul.f32 %v4973_v6, %v6303_v2  ;;  %v697_v15 = vpop.f32.mrb[23].mxu0 }
 0x182   : > { %5162 = vmatprep.subr.bf16.mxu1 %v6404_v53  ;;  %v807_v18 = vadd.f32 %v6308_v4, %v768_v1  ;;  %v769_v19 = vmul.f32 %v6303_v2, %v697_v15  ;;  %4999 = vmatmul.mubr.msk.bf16.gmra.mrb[44].mxu0 %vm410_vm0, %v6411_v7 }
 0x183   : > { %5106 = vmatprep.mubr.msk.bf16.mxu1 %vm410_vm0, %v6413_v8  ;;  %v841_v20 = vmax.f32 %v809_v12, 0.0  ;;  %v810_v21 = vadd.f32 %v6308_v4, %v771_v13  ;;  %5002 = vmatprep.mubr.msk.bf16.mxu0 %vm410_vm0, %v6417_v16 }
 0x184   : > { %5107 = vmatmul.mubr.msk.bf16.gmra.mrb[4].mxu1 %vm410_vm0, %v6419_v17  ;;  %v839_v22 = vmax.f32 %v807_v18, 0.0  ;;  %v808_v23 = vadd.f32 %v6308_v4, %v769_v19  ;;  %v1231_v43 = vld [vmem:[#allocation2 + $0xf1] sm:$0xff] }
 0x185   : > { %874 = vst.msk [vmem:[#allocation2 + $0x121] sm:$0xff] %vm410_vm0, %v841_v20  ;;  %v842_v24 = vmax.f32 %v810_v21, 0.0  ;;  %v1229_v27 = vld [vmem:[#allocation2 + $0xd9] sm:$0xff]  ;;  %v2030_v45 = vld [vmem:[#allocation2 + $0xf0] sm:$0xff] }
 0x186   : > { %872 = vst.msk [vmem:[#allocation2 + $0x109] sm:$0xff] %vm410_vm0, %v839_v22  ;;  %v840_v25 = vmax.f32 %v808_v23, 0.0  ;;  %v4976_v26 = vpop.f32.mrb[24].mxu0  ;;  %v1232_v28 = vld [vmem:[#allocation2 + $0xf9] sm:$0xff] }
 0x187   : > { %v2031_v29 = vld [vmem:[#allocation2 + $0xf8] sm:$0xff]  ;;  %875 = vst.msk [vmem:[#allocation2 + $0x129] sm:$0xff] %vm410_vm0, %v842_v24  ;;  %v774_v30 = vmul.f32 %v4976_v26, %v6303_v2  ;;  %v710_v31 = vpop.f32.mrb[25].mxu0  ;;  %v1230_v32 = vld [vmem:[#allocation2 + $0xe1] sm:$0xff]  ;;  %v6446_v49 = vpack.c.bf16 %v1232_v28, %v1231_v43 }
 0x188   : > { %v2028_v33 = vld [vmem:[#allocation2 + $0xd8] sm:$0xff]  ;;  %v2029_v36 = vld [vmem:[#allocation2 + $0xe0] sm:$0xff]  ;;  %873 = vst.msk [vmem:[#allocation2 + $0x111] sm:$0xff] %vm410_vm0, %v840_v25  ;;  %v772_v37 = vmul.f32 %v6303_v2, %v710_v31  ;;  %v4977_v38 = vpop.f32.mrb[26].mxu0  ;;  %v6440_v39 = vpack.c.bf16 %v1230_v32, %v1229_v27  ;;  %v6448_v51 = vpack.c.bf16 %v2031_v29, %v2030_v45 }
 0x189   : > { %v6442_v40 = vpack.c.bf16 %v2029_v36, %v2028_v33  ;;  %v813_v46 = vadd.f32 %v6308_v4, %v774_v30  ;;  %v775_v47 = vmul.f32 %v4977_v38, %v6303_v2  ;;  %v713_v48 = vpop.f32.mrb[27].mxu0 }
 0x18a   : > { %v811_v52 = vadd.f32 %v6308_v4, %v772_v37  ;;  %v773_v54 = vmul.f32 %v6303_v2, %v713_v48  ;;  %5003 = vmatmul.mubr.msk.bf16.gmra.mrb[48].mxu0 %vm410_vm0, %v6440_v39 }
 0x18b   : > { %5110 = vmatprep.mubr.msk.bf16.mxu1 %vm410_vm0, %v6442_v40  ;;  %v845_v55 = vmax.f32 %v813_v46, 0.0  ;;  %v814_v56 = vadd.f32 %v6308_v4, %v775_v47  ;;  %5006 = vmatprep.mubr.msk.bf16.mxu0 %vm410_vm0, %v6446_v49 }
 0x18c   : > { %5111 = vmatmul.mubr.msk.bf16.gmra.mrb[8].mxu1 %vm410_vm0, %v6448_v51  ;;  %v843_v58 = vmax.f32 %v811_v52, 0.0  ;;  %v812_v59 = vadd.f32 %v6308_v4, %v773_v54  ;;  %v1235_v21 = vld [vmem:[#allocation2 + $0x121] sm:$0xff] }
 0x18d   : > { %878 = vst.msk [vmem:[#allocation2 + $0x151] sm:$0xff] %vm410_vm0, %v845_v55  ;;  %v846_v60 = vmax.f32 %v814_v56, 0.0  ;;  %v1233_v0 = vld [vmem:[#allocation2 + $0x109] sm:$0xff]  ;;  %v2034_v22 = vld [vmem:[#allocation2 + $0x120] sm:$0xff] }
 0x18e   : > { %876 = vst.msk [vmem:[#allocation2 + $0x139] sm:$0xff] %vm410_vm0, %v843_v58  ;;  %v844_v61 = vmax.f32 %v812_v59, 0.0  ;;  %v4980_v3 = vpop.f32.mrb[28].mxu0  ;;  %v1236_v5 = vld [vmem:[#allocation2 + $0x129] sm:$0xff]  ;;  %v1159_v58 = vld [vmem:[#allocation2] sm:$0xff] }
 0x18f   : > { %v2035_v1 = vld [vmem:[#allocation2 + $0x128] sm:$0xff]  ;;  %879 = vst.msk [vmem:[#allocation2 + $0x159] sm:$0xff] %vm410_vm0, %v846_v60  ;;  %v778_v6 = vmul.f32 %v4980_v3, %v6303_v2  ;;  %v726_v10 = vpop.f32.mrb[29].mxu0  ;;  %v1234_v11 = vld [vmem:[#allocation2 + $0x111] sm:$0xff]  ;;  %v6474_v26 = vpack.c.bf16 %v1236_v5, %v1235_v21 }
 0x190   : > { %v2032_v12 = vld [vmem:[#allocation2 + $0x108] sm:$0xff]  ;;  %v2033_v13 = vld [vmem:[#allocation2 + $0x110] sm:$0xff]  ;;  %877 = vst.msk [vmem:[#allocation2 + $0x141] sm:$0xff] %vm410_vm0, %v844_v61  ;;  %v776_v15 = vmul.f32 %v6303_v2, %v726_v10  ;;  %v4981_v18 = vpop.f32.mrb[30].mxu0  ;;  %v6468_v19 = vpack.c.bf16 %v1234_v11, %v1233_v0  ;;  %v6476_v27 = vpack.c.bf16 %v2035_v1, %v2034_v22 }
 0x191   : > { %v6470_v20 = vpack.c.bf16 %v2033_v13, %v2032_v12  ;;  %v817_v23 = vadd.f32 %v6308_v4, %v778_v6  ;;  %v779_v24 = vmul.f32 %v4981_v18, %v6303_v2  ;;  %v729_v25 = vpop.f32.mrb[31].mxu0  ;;  %v1160_v59 = vld [vmem:[#allocation2 + $0x8] sm:$0xff]  ;;  %v1162_v13 = vld [vmem:[#allocation2 + $0x20] sm:$0xff]  ;;  %v1161_v18 = vld [vmem:[#allocation2 + $0x18] sm:$0xff] }
 0x192   : > { %v815_v28 = vadd.f32 %v6308_v4, %v776_v15  ;;  %v777_v29 = vmul.f32 %v6303_v2, %v729_v25  ;;  %5007 = vmatmul.mubr.msk.bf16.gmra.mrb[52].mxu0 %vm410_vm0, %v6468_v19  ;;  %v1191_v1 = vpack.c.bf16 %v1160_v59, %v1159_v58  ;;  %v1164_v15 = vld [vmem:[#allocation2 + $0x38] sm:$0xff]  ;;  %v6525_v21 = vpack.c.bf16 %v1162_v13, %v1161_v18  ;;  %v1163_v22 = vld [vmem:[#allocation2 + $0x30] sm:$0xff]  ;;  %v2633_v59 = vld [vmem:[#allocation2 + $0x82] sm:$0xff] }
 0x193   : > { %5114 = vmatprep.mubr.msk.bf16.mxu1 %vm410_vm0, %v6470_v20  ;;  %v849_v30 = vmax.f32 %v817_v23, 0.0  ;;  %v818_v31 = vadd.f32 %v6308_v4, %v779_v24  ;;  %5010 = vmatprep.mubr.msk.bf16.mxu0 %vm410_vm0, %v6474_v26  ;;  %v6527_v23 = vpack.c.bf16 %v1164_v15, %v1163_v22  ;;  %v5699_v24 = vld [vmem:[#allocation6 + $0x58] sm:$0xff]   ;;  %v5701_v25 = vld [vmem:[#allocation6 + $0x28] sm:$0xff]  }
 0x194   : > { %5115 = vmatmul.mubr.msk.bf16.gmra.mrb[12].mxu1 %vm410_vm0, %v6476_v27  ;;  %v847_v32 = vmax.f32 %v815_v28, 0.0  ;;  %v816_v33 = vadd.f32 %v6308_v4, %v777_v29  ;;  %v1239_v4 = vld [vmem:[#allocation2 + $0x151] sm:$0xff]  ;;  %v1168_v29 = vld [vmem:[#allocation2 + $0x68] sm:$0xff]  ;;  %v2632_v58 = vld [vmem:[#allocation2 + $0x7a] sm:$0xff] }
 0x195   : > { %882 = vst.msk [vmem:[#allocation2 + $0x181] sm:$0xff] %vm410_vm0, %v849_v30  ;;  %v850_v2 = vmax.f32 %v818_v31, 0.0  ;;  %v1237_v37 = vld [vmem:[#allocation2 + $0x139] sm:$0xff]  ;;  %v2038_v54 = vld [vmem:[#allocation2 + $0x150] sm:$0xff]  ;;  %v1165_v30 = vld [vmem:[#allocation2 + $0x48] sm:$0xff] }
 0x196   : > { %880 = vst.msk [vmem:[#allocation2 + $0x169] sm:$0xff] %vm410_vm0, %v847_v32  ;;  %v848_v36 = vmax.f32 %v816_v33, 0.0  ;;  %v1240_v38 = vld [vmem:[#allocation2 + $0x159] sm:$0xff]  ;;  %v5702_v28 = vld [vmem:[#allocation6 + $0x60] sm:$0xff]   ;;  %v2641_v18 = vld [vmem:[#allocation2 + $0xe2] sm:$0xff] }
 0x197   : > { %v2039_v43 = vld [vmem:[#allocation2 + $0x158] sm:$0xff]  ;;  %883 = vst.msk [vmem:[#allocation2 + $0x189] sm:$0xff] %vm410_vm0, %v850_v2  ;;  %v1238_v45 = vld [vmem:[#allocation2 + $0x141] sm:$0xff]  ;;  %v6498_v55 = vpack.c.bf16 %v1240_v38, %v1239_v4  ;;  %v1723_v13 = vld [vmem:[#allocation2 + $0xca] sm:$0xff] }
 0x198   : > { %v2036_v46 = vld [vmem:[#allocation2 + $0x138] sm:$0xff]  ;;  %v2037_v47 = vld [vmem:[#allocation2 + $0x140] sm:$0xff]  ;;  %881 = vst.msk [vmem:[#allocation2 + $0x171] sm:$0xff] %vm410_vm0, %v848_v36  ;;  %v6494_v48 = vpack.c.bf16 %v1238_v45, %v1237_v37  ;;  %v6500_v56 = vpack.c.bf16 %v2039_v43, %v2038_v54  ;;  %v2628_v37 = vld [vmem:[#allocation2 + $0x4a] sm:$0xff] }
 0x199   : > { %v6496_v52 = vpack.c.bf16 %v2037_v47, %v2036_v46  ;;  %v1167_v32 = vld [vmem:[#allocation2 + $0x60] sm:$0xff]  ;;  %v1710_v2 = vld [vmem:[#allocation2 + $0x32] sm:$0xff]  ;;  %v1715_v54 = vld [vmem:[#allocation2 + $0x6a] sm:$0xff] }
 0x19a   : > { %5011 = vmatmul.mubr.msk.bf16.gmra.mrb[56].mxu0 %vm410_vm0, %v6494_v48  ;;  %v6541_v33 = vpack.c.bf16 %v1168_v29, %v1167_v32  ;;  %v1711_v36 = vld [vmem:[#allocation2 + $0x3a] sm:$0xff]  ;;  %v2629_v38 = vld [vmem:[#allocation2 + $0x52] sm:$0xff]  ;;  %v1714_v4 = vld [vmem:[#allocation2 + $0x62] sm:$0xff] }
 0x19b   : > { %5118 = vmatprep.mubr.msk.bf16.mxu1 %vm410_vm0, %v6496_v52  ;;  %5014 = vmatprep.mubr.msk.bf16.mxu0 %vm410_vm0, %v6498_v55  ;;  %v6600_v43 = vpack.c.bf16 %v1711_v36, %v1710_v2  ;;  %v5703_v45 = vld [vmem:[#allocation6 + $0x68] sm:$0xff]   ;;  %v6603_v46 = vpack.c.bf16 %v2629_v38, %v2628_v37  ;;  %v6612_v47 = vld [vmem:[#allocation6 + $0x70] sm:$0xff]  }
 0x19c   : > { %5119 = vmatmul.mubr.msk.bf16.gmra.mrb[16].mxu1 %vm410_vm0, %v6500_v56  ;;  %v2042_v11 = vld [vmem:[#allocation2 + $0x180] sm:$0xff]  ;;  %v2645_v29 = vld [vmem:[#allocation2 + $0x112] sm:$0xff] }
 0x19d   : > { %v1241_v60 = vld [vmem:[#allocation2 + $0x169] sm:$0xff]  ;;  %v2640_v15 = vld [vmem:[#allocation2 + $0xda] sm:$0xff] }
 0x19e   : > { %v2043_v61 = vld [vmem:[#allocation2 + $0x188] sm:$0xff] }
 0x19f   : > { %v1242_v3 = vld [vmem:[#allocation2 + $0x171] sm:$0xff]  ;;  %v2040_v0 = vld [vmem:[#allocation2 + $0x168] sm:$0xff]  ;;  %v6514_v12 = vpack.c.bf16 %v2043_v61, %v2042_v11  ;;  %v6621_v61 = vpack.c.bf16 %v2633_v59, %v2632_v58 }
 0x1a0   : > { %v2041_v5 = vld [vmem:[#allocation2 + $0x170] sm:$0xff]  ;;  %v6510_v6 = vpack.c.bf16 %v1242_v3, %v1241_v60  ;;  %v6615_v60 = vpack.c.bf16 %v1715_v54, %v1714_v4  ;;  %v1719_v3 = vld [vmem:[#allocation2 + $0x9a] sm:$0xff]  ;;  %v1722_v11 = vld [vmem:[#allocation2 + $0xc2] sm:$0xff] }
 0x1a1   : > { %v6512_v10 = vpack.c.bf16 %v2041_v5, %v2040_v0  ;;  %v2636_v0 = vld [vmem:[#allocation2 + $0xaa] sm:$0xff]  ;;  %v6641_v22 = vpack.c.bf16 %v1723_v13, %v1722_v11  ;;  %v2653_v36 = vld [vmem:[#allocation2 + $0x172] sm:$0xff] }
 0x1a2   : > { %5015 = vmatmul.mubr.msk.bf16.gmra.mrb[60].mxu0 %vm410_vm0, %v6510_v6  ;;  %v2652_v2 = vld [vmem:[#allocation2 + $0x16a] sm:$0xff] }
 0x1a3   : > { %5122 = vmatprep.mubr.msk.bf16.mxu1 %vm410_vm0, %v6512_v10  ;;  %5022 = vmatprep.mubr.msk.bf16.mxu0 %vm410_vm0, %v1191_v1  ;;  %v6681_v38 = vpack.c.bf16 %v2653_v36, %v2652_v2  ;;  %v2655_v4 = vld [vmem:[#allocation2 + $0x18a] sm:$0xff] }
 0x1a4   : > { %5123 = vmatmul.mubr.msk.bf16.gmra.mrb[20].mxu1 %vm410_vm0, %v6514_v12  ;;  %v5705_v58 = vld [vmem:[#allocation6 + $0x78] sm:$0xff]  }
 0x1a5   : > { %5130 = vmatprep.mubr.msk.bf16.mxu1 %vm410_vm0, %v6336_v44  ;;  %v1166_v44 = vld [vmem:[#allocation2 + $0x50] sm:$0xff] }
 0x1a6   : > { %v6539_v31 = vpack.c.bf16 %v1166_v44, %v1165_v30  ;;  %v1727_v44 = vld [vmem:[#allocation2 + $0xfa] sm:$0xff]  ;;  %v3247_v11 = vld [vmem:[#allocation2 + $0xa9] sm:$0xff] }
 0x1aa   : > { %5023 = vmatmul.mubr.msk.bf16.vlgmr.msra.gmra.mrb[32].mxu0 %vm410_vm0, %v6525_v21 }
 0x1ab   : > { %5026 = vmatprep.mubr.msk.bf16.mxu0 %vm410_vm0, %v6527_v23  ;;  %5055 = vmatpush3.bf16.msra.mxu0 %v6351_v57  ;;  %v1707_v57 = vld [vmem:[#allocation2 + $0xa] sm:$0xff] }
 0x1ac   : > { %5131 = vmatmul.mubr.msk.bf16.vlgmr.msra.gmra.mrb[24].mxu1 %vm410_vm0, %v6340_v50  ;;  %5056 = vmatprep.subr.bf16.mxu0 %v5701_v25  ;;  %v1706_v50 = vld [vmem:[#allocation2 + $0x2] sm:$0xff] }
 0x1ad   : > { %5163 = vmatpush3.bf16.msra.mxu1 %v6404_v53  ;;  %5134 = vmatprep.mubr.msk.bf16.mxu1 %vm410_vm0, %v6359_v9  ;;  %v2349_v9 = vld [vmem:[#allocation2 + $0x189] sm:$0xff]  ;;  %v2348_v53 = vld [vmem:[#allocation2 + $0x181] sm:$0xff] }
 0x1ae   : > { %5164 = vmatprep.subr.bf16.mxu1 %v5699_v24 }
 0x1af   : > { %5057 = vmatpush3.bf16.msra.mxu0 %v5701_v25  ;;  %v1726_v25 = vld [vmem:[#allocation2 + $0xf2] sm:$0xff] }
 0x1b0   : > { %5090 = vmatprep.subr.bf16.mxu0 %v6286_v62  ;;  %v6653_v30 = vpack.c.bf16 %v1727_v44, %v1726_v25  ;;  %v5708_v25 = vld [vmem:[%s7163_s7] sm:$0xff]  }
 0x1b1   : > { %5165 = vmatpush3.bf16.msra.mxu1 %v5699_v24  ;;  %v6645_v24 = vpack.c.bf16 %v2641_v18, %v2640_v15  ;;  %v3249_v15 = vld [vmem:[#allocation2 + $0xc1] sm:$0xff] }
 0x1b2   : > { %5198 = vmatprep.subr.bf16.mxu1 %v5702_v28  ;;  %5027 = vmatmul.mubr.msk.bf16.gmra.mrb[36].mxu0 %vm410_vm0, %v6539_v31 }
 0x1b3   : > { %5030 = vmatprep.mubr.msk.bf16.mxu0 %vm410_vm0, %v6541_v33 }
 0x1b4   : > { %5135 = vmatmul.mubr.msk.bf16.gmra.mrb[28].mxu1 %vm410_vm0, %v6364_v14  ;;  %v2624_v14 = vld [vmem:[#allocation2 + $0x1a] sm:$0xff] }
 0x1b5   : > { %5138 = vmatprep.mubr.msk.bf16.mxu1 %vm410_vm0, %v6380_v34  ;;  %v2625_v34 = vld [vmem:[#allocation2 + $0x22] sm:$0xff] }
 0x1ba   : > { %5031 = vmatmul.mubr.msk.bf16.gmra.mrb[40].mxu0 %vm410_vm0, %v6382_v35 }
 0x1bb   : > { %5034 = vmatprep.mubr.msk.bf16.mxu0 %vm410_vm0, %v6388_v42 }
 0x1bc   : > { %5139 = vmatmul.mubr.msk.bf16.gmra.mrb[0].mxu1 %vm410_vm0, %v6386_v41  ;;  %v1738_v41 = vpack.c.bf16 %v1707_v57, %v1706_v50  ;;  %v1730_v50 = vld [vmem:[#allocation2 + $0x122] sm:$0xff]  ;;  %v1731_v57 = vld [vmem:[#allocation2 + $0x12a] sm:$0xff] }
 0x1bd   : > { %5142 = vmatprep.mubr.msk.bf16.mxu1 %vm410_vm0, %v6411_v7  ;;  %v6592_v7 = vpack.c.bf16 %v2349_v9, %v2348_v53  ;;  %v2648_v9 = vld [vmem:[#allocation2 + $0x13a] sm:$0xff]  ;;  %v1734_v53 = vld [vmem:[#allocation2 + $0x152] sm:$0xff] }
 0x1c2   : > { %5035 = vmatmul.mubr.msk.bf16.gmra.mrb[44].mxu0 %vm410_vm0, %v6413_v8 }
 0x1c3   : > { %5038 = vmatprep.mubr.msk.bf16.mxu0 %vm410_vm0, %v6419_v17 }
 0x1c4   : > { %5143 = vmatmul.mubr.msk.bf16.gmra.mrb[4].mxu1 %vm410_vm0, %v6417_v16  ;;  %v2656_v16 = vpack.c.bf16 %v2625_v34, %v2624_v14  ;;  %v2649_v14 = vld [vmem:[#allocation2 + $0x142] sm:$0xff]  ;;  %v6665_v34 = vpack.c.bf16 %v1731_v57, %v1730_v50 }
 0x1c5   : > { %5146 = vmatprep.mubr.msk.bf16.mxu1 %vm410_vm0, %v6440_v39 }
 0x1ca   : > { %5039 = vmatmul.mubr.msk.bf16.gmra.mrb[48].mxu0 %vm410_vm0, %v6442_v40 }
 0x1cb   : > { %5042 = vmatprep.mubr.msk.bf16.mxu0 %vm410_vm0, %v6448_v51 }
 0x1cc   : > { %5147 = vmatmul.mubr.msk.bf16.gmra.mrb[8].mxu1 %vm410_vm0, %v6446_v49 }
 0x1cd   : > { %5150 = vmatprep.mubr.msk.bf16.mxu1 %vm410_vm0, %v6468_v19 }
 0x1d2   : > { %5043 = vmatmul.mubr.msk.bf16.gmra.mrb[52].mxu0 %vm410_vm0, %v6470_v20 }
 0x1d3   : > { %5046 = vmatprep.mubr.msk.bf16.mxu0 %vm410_vm0, %v6476_v27 }
 0x1d4   : > { %5151 = vmatmul.mubr.msk.bf16.gmra.mrb[12].mxu1 %vm410_vm0, %v6474_v26 }
 0x1d5   : > { %5154 = vmatprep.mubr.msk.bf16.mxu1 %vm410_vm0, %v6494_v48 }
 0x1da   : > { %5047 = vmatmul.mubr.msk.bf16.gmra.mrb[56].mxu0 %vm410_vm0, %v6496_v52 }
 0x1db   : > { %5050 = vmatprep.mubr.msk.bf16.mxu0 %vm410_vm0, %v6500_v56 }
 0x1dc   : > { %5155 = vmatmul.mubr.msk.bf16.gmra.mrb[16].mxu1 %vm410_vm0, %v6498_v55 }
 0x1dd   : > { %5158 = vmatprep.mubr.msk.bf16.mxu1 %vm410_vm0, %v6510_v6 }
 0x1e2   : > { %5051 = vmatmul.mubr.msk.bf16.gmra.mrb[60].mxu0 %vm410_vm0, %v6512_v10 }
 0x1e3   : > { %5058 = vmatprep.mubr.msk.bf16.mxu0 %vm410_vm0, %v1738_v41  ;;  %v6669_v41 = vpack.c.bf16 %v2649_v14, %v2648_v9 }
 0x1e4   : > { %5159 = vmatmul.mubr.msk.bf16.gmra.mrb[20].mxu1 %vm410_vm0, %v6592_v7 }
 0x1e5   : > { %5166 = vmatprep.mubr.msk.bf16.mxu1 %vm410_vm0, %v2656_v16 }
 0x1ea   : > { %5059 = vmatmul.mubr.msk.bf16.vlgmr.msra.gmra.mrb[32].mxu0 %vm410_vm0, %v2656_v16  ;;  %v1735_v16 = vld [vmem:[#allocation2 + $0x15a] sm:$0xff] }
 0x1eb   : > { %5062 = vmatprep.mubr.msk.bf16.mxu0 %vm410_vm0, %v6600_v43  ;;  %5091 = vmatpush3.bf16.msra.mxu0 %v6286_v62  ;;  %v1718_v62 = vld [vmem:[#allocation2 + $0x92] sm:$0xff]  ;;  %v6677_v37 = vpack.c.bf16 %v1735_v16, %v1734_v53 }
 0x1ec   : > { %5167 = vmatmul.mubr.msk.bf16.vlgmr.msra.gmra.mrb[24].mxu1 %vm410_vm0, %v6600_v43  ;;  %5092 = vmatprep.subr.bf16.mxu0 %v6290_v63  ;;  %v6629_v5 = vpack.c.bf16 %v1719_v3, %v1718_v62  ;;  %v3245_v62 = vld [vmem:[#allocation2 + $0x91] sm:$0xff] }
 0x1ed   : > { %5199 = vmatpush3.bf16.msra.mxu1 %v5702_v28  ;;  %5170 = vmatprep.mubr.msk.bf16.mxu1 %vm410_vm0, %v6603_v46  ;;  %v2644_v28 = vld [vmem:[#allocation2 + $0x10a] sm:$0xff] }
 0x1ee   : > { %5200 = vmatprep.subr.bf16.mxu1 %v5703_v45  ;;  %v6657_v32 = vpack.c.bf16 %v2645_v29, %v2644_v28 }
 0x1ef   : > { %5093 = vmatpush3.bf16.msra.mxu0 %v6290_v63  ;;  %v2637_v63 = vld [vmem:[#allocation2 + $0xb2] sm:$0xff] }
 0x1f0   : > { %v6633_v1 = vpack.c.bf16 %v2637_v63, %v2636_v0  ;;  %v3248_v0 = vld [vmem:[#allocation2 + $0xb1] sm:$0xff]  ;;  %v3250_v63 = vld [vmem:[#allocation2 + $0xc9] sm:$0xff]  ;;  %5306 = vmatprep.subr.bf16.mxu0 %v5708_v25 }
 0x1f1   : > { %5201 = vmatpush3.bf16.msra.mxu1 %v5703_v45  ;;  %v2654_v45 = vld [vmem:[#allocation2 + $0x182] sm:$0xff]  ;;  %v3274_v13 = vpack.c.bf16 %v3248_v0, %v3247_v11  ;;  %v3275_v18 = vpack.c.bf16 %v3250_v63, %v3249_v15 }
 0x1f2   : > { %5234 = vmatprep.subr.bf16.mxu1 %v6612_v47  ;;  %5063 = vmatmul.mubr.msk.bf16.gmra.mrb[36].mxu0 %vm410_vm0, %v6603_v46  ;;  %v6689_v54 = vpack.c.bf16 %v2655_v4, %v2654_v45 }
 0x1f3   : > { %5066 = vmatprep.mubr.msk.bf16.mxu0 %vm410_vm0, %v6615_v60 }
 0x1f4   : > { %5171 = vmatmul.mubr.msk.bf16.gmra.mrb[28].mxu1 %vm410_vm0, %v6615_v60 }
 0x1f5   : > { %5174 = vmatprep.mubr.msk.bf16.mxu1 %vm410_vm0, %v6621_v61 }
 0x1fa   : > { %5067 = vmatmul.mubr.msk.bf16.gmra.mrb[40].mxu0 %vm410_vm0, %v6621_v61 }
 0x1fb   : > { %5070 = vmatprep.mubr.msk.bf16.mxu0 %vm410_vm0, %v6629_v5 }
 0x1fc   : > { %5175 = vmatmul.mubr.msk.bf16.gmra.mrb[0].mxu1 %vm410_vm0, %v6629_v5 }
 0x1fd   : > { %5178 = vmatprep.mubr.msk.bf16.mxu1 %vm410_vm0, %v6633_v1 }
 0x202   : > { %5071 = vmatmul.mubr.msk.bf16.gmra.mrb[44].mxu0 %vm410_vm0, %v6633_v1 }
 0x203   : > { %5074 = vmatprep.mubr.msk.bf16.mxu0 %vm410_vm0, %v6641_v22 }
 0x204   : > { %5179 = vmatmul.mubr.msk.bf16.gmra.mrb[4].mxu1 %vm410_vm0, %v6641_v22 }
 0x205   : > { %5182 = vmatprep.mubr.msk.bf16.mxu1 %vm410_vm0, %v6645_v24 }
 0x20a   : > { %5075 = vmatmul.mubr.msk.bf16.gmra.mrb[48].mxu0 %vm410_vm0, %v6645_v24 }
 0x20b   : > { %5078 = vmatprep.mubr.msk.bf16.mxu0 %vm410_vm0, %v6653_v30 }
 0x20c   : > { %5183 = vmatmul.mubr.msk.bf16.gmra.mrb[8].mxu1 %vm410_vm0, %v6653_v30 }
 0x20d   : > { %5186 = vmatprep.mubr.msk.bf16.mxu1 %vm410_vm0, %v6657_v32 }
 0x212   : > { %5079 = vmatmul.mubr.msk.bf16.gmra.mrb[52].mxu0 %vm410_vm0, %v6657_v32 }
 0x213   : > { %5082 = vmatprep.mubr.msk.bf16.mxu0 %vm410_vm0, %v6665_v34 }
 0x214   : > { %5187 = vmatmul.mubr.msk.bf16.gmra.mrb[12].mxu1 %vm410_vm0, %v6665_v34 }
 0x215   : > { %5190 = vmatprep.mubr.msk.bf16.mxu1 %vm410_vm0, %v6669_v41 }
 0x21a   : > { %5083 = vmatmul.mubr.msk.bf16.gmra.mrb[56].mxu0 %vm410_vm0, %v6669_v41 }
 0x21b   : > { %5086 = vmatprep.mubr.msk.bf16.mxu0 %vm410_vm0, %v6677_v37 }
 0x21c   : > { %5191 = vmatmul.mubr.msk.bf16.gmra.mrb[16].mxu1 %vm410_vm0, %v6677_v37 }
 0x21d   : > { %5194 = vmatprep.mubr.msk.bf16.mxu1 %vm410_vm0, %v6681_v38 }
 0x222   : > { %5087 = vmatmul.mubr.msk.bf16.gmra.mrb[60].mxu0 %vm410_vm0, %v6681_v38 }
 0x223   : > { %5094 = vmatprep.mubr.msk.bf16.mxu0 %vm410_vm0, %v6525_v21  ;;  %v5706_v21 = vld [vmem:[#allocation6 + $0x80] sm:$0xff]  }
 0x224   : > { %5195 = vmatmul.mubr.msk.bf16.gmra.mrb[20].mxu1 %vm410_vm0, %v6689_v54 }
 0x225   : > { %5202 = vmatprep.mubr.msk.bf16.mxu1 %vm410_vm0, %v6527_v23 }
 0x22a   : > { %5095 = vmatmul.mubr.msk.bf16.vlgmr.msra.gmra.mrb[32].mxu0 %vm410_vm0, %v6527_v23  ;;  %v3241_v23 = vld [vmem:[#allocation2 + $0x61] sm:$0xff] }
 0x22b   : > { %5098 = vmatprep.mubr.msk.bf16.mxu0 %vm410_vm0, %v6539_v31  ;;  %5307 = vmatpush3.bf16.msra.mxu0 %v5708_v25 }
 0x22c   : > { %5203 = vmatmul.mubr.msk.bf16.vlgmr.msra.gmra.mrb[24].mxu1 %vm410_vm0, %v6539_v31  ;;  %v5707_v31 = vld [vmem:[#allocation6 + $0x88] sm:$0xff]  }
 0x22d   : > { %5235 = vmatpush3.bf16.msra.mxu1 %v6612_v47  ;;  %5206 = vmatprep.mubr.msk.bf16.mxu1 %vm410_vm0, %v6541_v33  ;;  %v3243_v47 = vld [vmem:[#allocation2 + $0x79] sm:$0xff] }
 0x22e   : > { %5236 = vmatprep.subr.bf16.mxu1 %v5705_v58 }
 0x231   : > { %5237 = vmatpush3.bf16.msra.mxu1 %v5705_v58 }
 0x232   : > { %5270 = vmatprep.subr.bf16.mxu1 %v5706_v21  ;;  %5099 = vmatmul.mubr.msk.bf16.gmra.mrb[36].mxu0 %vm410_vm0, %v6541_v33  ;;  %v3246_v33 = vld [vmem:[#allocation2 + $0x99] sm:$0xff] }
 0x233   : > { %v3273_v3 = vpack.c.bf16 %v3246_v33, %v3245_v62 }
 0x234   : > { %5207 = vmatmul.mubr.msk.bf16.gmra.mrb[28].mxu1 %vm410_vm0, %v6382_v35  ;;  %v2961_v35 = vld [vmem:[#allocation2 + $0x198] sm:$0xff] }
 0x235   : > { %5210 = vmatprep.mubr.msk.bf16.mxu1 %vm410_vm0, %v6388_v42  ;;  %v2962_v42 = vld [vmem:[#allocation2 + $0x1a0] sm:$0xff] }
 0x23c   : > { %5211 = vmatmul.mubr.msk.bf16.gmra.mrb[0].mxu1 %vm410_vm0, %v6413_v8  ;;  %v2978_v8 = vpack.c.bf16 %v2962_v42, %v2961_v35  ;;  %v5709_v35 = vld [vmem:[%s7163_s7 + $0x8] sm:$0xff]  }
 0x23d   : > { %5214 = vmatprep.mubr.msk.bf16.mxu1 %vm410_vm0, %v6419_v17  ;;  %v3238_v17 = vld [vmem:[#allocation2 + $0x39] sm:$0xff]  ;;  %5308 = vmatprep.subr.bf16.mxu0 %v5709_v35 }
 0x23e   : > { %5309 = vmatpush3.bf16.msra.mxu0 %v5709_v35 }
 0x244   : > { %5215 = vmatmul.mubr.msk.bf16.gmra.mrb[4].mxu1 %vm410_vm0, %v6442_v40  ;;  %v3237_v40 = vld [vmem:[#allocation2 + $0x31] sm:$0xff] }
 0x245   : > { %5218 = vmatprep.mubr.msk.bf16.mxu1 %vm410_vm0, %v6448_v51  ;;  %v3269_v51 = vpack.c.bf16 %v3238_v17, %v3237_v40 }
 0x24c   : > { %5219 = vmatmul.mubr.msk.bf16.gmra.mrb[8].mxu1 %vm410_vm0, %v6470_v20  ;;  %v3240_v20 = vld [vmem:[#allocation2 + $0x51] sm:$0xff] }
 0x24d   : > { %5222 = vmatprep.mubr.msk.bf16.mxu1 %vm410_vm0, %v6476_v27  ;;  %v3242_v27 = vld [vmem:[#allocation2 + $0x69] sm:$0xff] }
 0x254   : > { %5223 = vmatmul.mubr.msk.bf16.gmra.mrb[12].mxu1 %vm410_vm0, %v6496_v52  ;;  %v3239_v52 = vld [vmem:[#allocation2 + $0x49] sm:$0xff] }
 0x255   : > { %5226 = vmatprep.mubr.msk.bf16.mxu1 %vm410_vm0, %v6500_v56  ;;  %v3270_v56 = vpack.c.bf16 %v3240_v20, %v3239_v52 }
 0x25c   : > { %5227 = vmatmul.mubr.msk.bf16.gmra.mrb[16].mxu1 %vm410_vm0, %v6512_v10  ;;  %v3271_v10 = vpack.c.bf16 %v3242_v27, %v3241_v23 }
 0x25d   : > { %5230 = vmatprep.mubr.msk.bf16.mxu1 %vm410_vm0, %v6514_v12  ;;  %v3244_v12 = vld [vmem:[#allocation2 + $0x81] sm:$0xff] }
 0x25e   : > { %v3272_v59 = vpack.c.bf16 %v3244_v12, %v3243_v47 }
 0x264   : > { %5231 = vmatmul.mubr.msk.bf16.gmra.mrb[20].mxu1 %vm410_vm0, %v2978_v8  ;;  %v6847_v8 = vld [vmem:[%s7161_s5] ss:$0 sm:$0xff] }
 0x265   : > { %5238 = vmatprep.mubr.msk.bf16.mxu1 %vm410_vm0, %v3269_v51  ;;  %v6852_v51 = vld [vmem:[%s7162_s6] ss:$0 sm:$0xff] }
 0x26c   : > { %5239 = vmatmul.mubr.msk.bf16.vlgmr.msra.gmra.mrb[24].mxu1 %vm410_vm0, %v3270_v56 }
 0x26d   : > { %5271 = vmatpush3.bf16.msra.mxu1 %v5706_v21  ;;  %5242 = vmatprep.mubr.msk.bf16.mxu1 %vm410_vm0, %v3271_v10 }
 0x26e   : > { %5272 = vmatprep.subr.bf16.mxu1 %v5707_v31 }
 0x271   : > { %5273 = vmatpush3.bf16.msra.mxu1 %v5707_v31 }
 0x274   : > { %5243 = vmatmul.mubr.msk.bf16.gmra.mrb[28].mxu1 %vm410_vm0, %v3272_v59 }
 0x275   : > { %5246 = vmatprep.mubr.msk.bf16.mxu1 %vm410_vm0, %v3273_v3 }
 0x27c   : > { %5247 = vmatmul.mubr.msk.bf16.gmra.mrb[0].mxu1 %vm410_vm0, %v3274_v13 }
 0x27d   : > { %5250 = vmatprep.mubr.msk.bf16.mxu1 %vm410_vm0, %v3275_v18 }
 0x284   : > { %5251 = vmatmul.mubr.msk.bf16.gmra.mrb[4].mxu1 %vm410_vm0, %v6440_v39  ;;  %v3267_v39 = vld [vmem:[#allocation2 + $0x199] sm:$0xff] }
 0x285   : > { %5254 = vmatprep.mubr.msk.bf16.mxu1 %vm410_vm0, %v6446_v49  ;;  %v3268_v49 = vld [vmem:[#allocation2 + $0x1a1] sm:$0xff] }
 0x286   : > { %v3284_v44 = vpack.c.bf16 %v3268_v49, %v3267_v39 }
 0x28c   : > { %5255 = vmatmul.mubr.msk.bf16.gmra.mrb[8].mxu1 %vm410_vm0, %v6468_v19 }
 0x28d   : > { %5258 = vmatprep.mubr.msk.bf16.mxu1 %vm410_vm0, %v6474_v26 }
 0x294   : > { %5259 = vmatmul.mubr.msk.bf16.gmra.mrb[12].mxu1 %vm410_vm0, %v6494_v48 }
 0x295   : > { %5262 = vmatprep.mubr.msk.bf16.mxu1 %vm410_vm0, %v6498_v55 }
 0x29c   : > { %5263 = vmatmul.mubr.msk.bf16.gmra.mrb[16].mxu1 %vm410_vm0, %v6510_v6 }
 0x29d   : > { %5266 = vmatprep.mubr.msk.bf16.mxu1 %vm410_vm0, %v6592_v7 }
 0x2a4   : > { %5267 = vmatmul.mubr.msk.bf16.gmra.mrb[20].mxu1 %vm410_vm0, %v3284_v44 }
 0x2a5   : > { %5274 = vmatprep.mubr.msk.bf16.mxu1 %vm410_vm0, %v6600_v43 }
 0x2ac   : > { %5275 = vmatmul.mubr.msk.bf16.vlgmr.msra.gmra.mrb[24].mxu1 %vm410_vm0, %v6603_v46 }
 0x2ad   : > { %5278 = vmatprep.mubr.msk.bf16.mxu1 %vm410_vm0, %v6615_v60  ;;  %v3573_v60 = vld [vmem:[#allocation2 + $0x19a] sm:$0xff] }
 0x2b4   : > { %5279 = vmatmul.mubr.msk.bf16.gmra.mrb[28].mxu1 %vm410_vm0, %v6621_v61  ;;  %v3574_v61 = vld [vmem:[#allocation2 + $0x1a2] sm:$0xff] }
 0x2b5   : > { %5282 = vmatprep.mubr.msk.bf16.mxu1 %vm410_vm0, %v6629_v5 }
 0x2bc   : > { %5283 = vmatmul.mubr.msk.bf16.gmra.mrb[0].mxu1 %vm410_vm0, %v6633_v1 }
 0x2bd   : > { %5286 = vmatprep.mubr.msk.bf16.mxu1 %vm410_vm0, %v6641_v22 }
 0x2c4   : > { %5287 = vmatmul.mubr.msk.bf16.gmra.mrb[4].mxu1 %vm410_vm0, %v6645_v24  ;;  %v3590_v24 = vpack.c.bf16 %v3574_v61, %v3573_v60 }
 0x2c5   : > { %5290 = vmatprep.mubr.msk.bf16.mxu1 %vm410_vm0, %v6653_v30 }
 0x2cc   : > { %5291 = vmatmul.mubr.msk.bf16.gmra.mrb[8].mxu1 %vm410_vm0, %v6657_v32 }
 0x2cd   : > { %5294 = vmatprep.mubr.msk.bf16.mxu1 %vm410_vm0, %v6665_v34  ;;  %v6784_v19 = vpop.f32.mrb[40].mxu0 }
 0x2ce   : > { %v6786_v26 = vpop.f32.mrb[41].mxu0 }
 0x2cf   : > { %v6788_v48 = vpop.f32.mrb[42].mxu0 }
 0x2d0   : > { %v6790_v55 = vpop.f32.mrb[43].mxu0 }
 0x2d4   : > { %5295 = vmatmul.mubr.msk.bf16.gmra.mrb[12].mxu1 %vm410_vm0, %v6669_v41 }
 0x2d5   : > { %5298 = vmatprep.mubr.msk.bf16.mxu1 %vm410_vm0, %v6677_v37  ;;  %v6796_v6 = vpop.f32.mrb[44].mxu0 }
 0x2d6   : > { %v6798_v7 = vpop.f32.mrb[45].mxu0 }
 0x2d7   : > { %v6800_v43 = vpop.f32.mrb[46].mxu0 }
 0x2d8   : > { %v6802_v46 = vpop.f32.mrb[47].mxu0 }
 0x2dc   : > { %5299 = vmatmul.mubr.msk.bf16.gmra.mrb[16].mxu1 %vm410_vm0, %v6681_v38 }
 0x2dd   : > { %5302 = vmatprep.mubr.msk.bf16.mxu1 %vm410_vm0, %v6689_v54  ;;  %v6808_v5 = vpop.f32.mrb[48].mxu0 }
 0x2de   : > { %v6810_v1 = vpop.f32.mrb[49].mxu0 }
 0x2df   : > { %v6812_v22 = vpop.f32.mrb[50].mxu0 }
 0x2e0   : > { %v6814_v28 = vpop.f32.mrb[51].mxu0 }
 0x2e4   : > { %5303 = vmatmul.mubr.msk.bf16.gmra.mrb[20].mxu1 %vm410_vm0, %v3590_v24 }
 0x2e5   : > { %v6817_v29 = vpop.f32.mrb[52].mxu0 }
 0x2e6   : > { %v6819_v30 = vpop.f32.mrb[53].mxu0 }
 0x2e7   : > { %v6821_v32 = vpop.f32.mrb[54].mxu0 }
 0x2e8   : > { %v6823_v50 = vpop.f32.mrb[55].mxu0 }
 0x2ed   : > { %v6825_v57 = vpop.f32.mrb[56].mxu0 }
 0x2ee   : > { %v6827_v9 = vpop.f32.mrb[57].mxu0 }
 0x2ef   : > { %v6829_v14 = vpop.f32.mrb[58].mxu0 }
 0x2f0   : > { %v6831_v34 = vpop.f32.mrb[59].mxu0 }
 0x2f5   : > { %v6833_v41 = vpop.f32.mrb[60].mxu0 }
 0x2f6   : > { %v6835_v53 = vpop.f32.mrb[61].mxu0 }
 0x2f7   : > { %v6837_v16 = vpop.f32.mrb[62].mxu0 }
 0x2f8   : > { %v6839_v2 = vpop.f32.mrb[63].mxu0 }
 0x2fd   : > { %v5096_v36 = vpop.f32.mrb[32].mxu0 }
 0x2fe   : > { %v2159_v37 = vpop.f32.mrb[33].mxu0 }
 0x2ff   : > { %v5097_v38 = vpop.f32.mrb[34].mxu0 }
 0x300   : > { %v2162_v45 = vpop.f32.mrb[35].mxu0 }
 0x305   : > { %v5100_v4 = vpop.f32.mrb[36].mxu0 }
 0x306   : > { %v2175_v54 = vpop.f32.mrb[37].mxu0 }
 0x307   : > { %v5101_v58 = vpop.f32.mrb[38].mxu0 }
 0x308   : > { %v2178_v21 = vpop.f32.mrb[39].mxu0 }
 0x37f   : > { %v5276_v42 = vpop.f32.mrb[24].mxu1 }
 0x380   : > { %v5346_v17 = vadd.f32 %v5276_v42, %v5096_v36  ;;  %v3690_v40 = vpop.f32.mrb[25].mxu1 }
 0x381   : > { %v5347_v20 = vadd.f32 %v3690_v40, %v2159_v37  ;;  %v5277_v27 = vpop.f32.mrb[26].mxu1 }
 0x382   : > { %v3858_v52 = vmul.f32 %v5346_v17, %v6847_v8  ;;  %v5348_v56 = vadd.f32 %v5277_v27, %v5097_v38  ;;  %v3693_v23 = vpop.f32.mrb[27].mxu1 }
 0x383   : > { %v3856_v31 = vmul.f32 %v5347_v20, %v6847_v8  ;;  %v5349_v10 = vadd.f32 %v3693_v23, %v2162_v45 }
 0x384   : > { %v3897_v12 = vadd.f32 %v6852_v51, %v3858_v52  ;;  %v3859_v33 = vmul.f32 %v5348_v56, %v6847_v8 }
 0x385   : > { %v3895_v47 = vadd.f32 %v6852_v51, %v3856_v31  ;;  %v3857_v59 = vmul.f32 %v5349_v10, %v6847_v8 }
 0x386   : > { %v3898_v62 = vadd.f32 %v6852_v51, %v3859_v33  ;;  %v3929_v63 = vmax.f32 %v3897_v12, 0.0 }
 0x387   : > { %v3896_v3 = vadd.f32 %v6852_v51, %v3857_v59  ;;  %v5280_v0 = vpop.f32.mrb[28].mxu1  ;;  %v3927_v18 = vmax.f32 %v3895_v47, 0.0 }
 0x388   : > { %v3930_v11 = vmax.f32 %v3898_v62, 0.0  ;;  %v5350_v13 = vadd.f32 %v5280_v0, %v5100_v4  ;;  %v3706_v15 = vpop.f32.mrb[29].mxu1 }
 0x389   : > { %v3928_v25 = vmax.f32 %v3896_v3, 0.0  ;;  %v5351_v39 = vadd.f32 %v3706_v15, %v2175_v54  ;;  %v5281_v49 = vpop.f32.mrb[30].mxu1 }
 0x38a   : > { %v3960_v44 = vpack.c.bf16 %v3930_v11, %v3929_v63  ;;  %v3862_v60 = vmul.f32 %v5350_v13, %v6847_v8  ;;  %v5352_v61 = vadd.f32 %v5281_v49, %v5101_v58  ;;  %v3709_v24 = vpop.f32.mrb[31].mxu1 }
 0x38b   : > { %v3959_v36 = vpack.c.bf16 %v3928_v25, %v3927_v18  ;;  %v3860_v37 = vmul.f32 %v5351_v39, %v6847_v8  ;;  %v5353_v38 = vadd.f32 %v3709_v24, %v2178_v21 }
 0x38c   : > { %v3901_v45 = vadd.f32 %v6852_v51, %v3862_v60  ;;  %v3863_v35 = vmul.f32 %v5352_v61, %v6847_v8 }
 0x38d   : > { %v3899_v4 = vadd.f32 %v6852_v51, %v3860_v37  ;;  %v3861_v42 = vmul.f32 %v5353_v38, %v6847_v8  ;;  %5310 = vmatprep.mubr.msk.bf16.mxu0 %vm410_vm0, %v3959_v36 }
 0x38e   : > { %v3902_v54 = vadd.f32 %v6852_v51, %v3863_v35  ;;  %5311 = vmatmul.mubr.msk.bf16.vlgmr.msra.gmra.mrb[64].mxu0 %vm410_vm0, %v3960_v44  ;;  %v3933_v40 = vmax.f32 %v3901_v45, 0.0 }
 0x38f   : > { %v3900_v58 = vadd.f32 %v6852_v51, %v3861_v42  ;;  %v5284_v17 = vpop.f32.mrb[0].mxu1  ;;  %v3931_v52 = vmax.f32 %v3899_v4, 0.0 }
 0x390   : > { %v3934_v20 = vmax.f32 %v3902_v54, 0.0  ;;  %v5354_v21 = vadd.f32 %v5284_v17, %v6784_v19  ;;  %v3722_v27 = vpop.f32.mrb[1].mxu1 }
 0x391   : > { %v3932_v56 = vmax.f32 %v3900_v58, 0.0  ;;  %v5355_v23 = vadd.f32 %v3722_v27, %v6786_v26  ;;  %v5285_v31 = vpop.f32.mrb[2].mxu1 }
 0x392   : > { %v3962_v10 = vpack.c.bf16 %v3934_v20, %v3933_v40  ;;  %v3866_v12 = vmul.f32 %v5354_v21, %v6847_v8  ;;  %v5356_v33 = vadd.f32 %v5285_v31, %v6788_v48  ;;  %v3725_v47 = vpop.f32.mrb[3].mxu1 }
 0x393   : > { %v3961_v59 = vpack.c.bf16 %v3932_v56, %v3931_v52  ;;  %v3864_v62 = vmul.f32 %v5355_v23, %v6847_v8  ;;  %v5357_v3 = vadd.f32 %v3725_v47, %v6790_v55 }
 0x394   : > { %v3905_v0 = vadd.f32 %v6852_v51, %v3866_v12  ;;  %v3867_v19 = vmul.f32 %v5356_v33, %v6847_v8 }
 0x395   : > { %v3903_v63 = vadd.f32 %v6852_v51, %v3864_v62  ;;  %v3865_v26 = vmul.f32 %v5357_v3, %v6847_v8  ;;  %5314 = vmatprep.mubr.msk.bf16.mxu0 %vm410_vm0, %v3961_v59 }
 0x396   : > { %v3906_v11 = vadd.f32 %v6852_v51, %v3867_v19  ;;  %5315 = vmatmul.mubr.msk.bf16.gmra.mrb[68].mxu0 %vm410_vm0, %v3962_v10  ;;  %v3937_v15 = vmax.f32 %v3905_v0, 0.0 }
 0x397   : > { %v3904_v48 = vadd.f32 %v6852_v51, %v3865_v26  ;;  %v5288_v13 = vpop.f32.mrb[4].mxu1  ;;  %v3935_v39 = vmax.f32 %v3903_v63, 0.0 }
 0x398   : > { %v3938_v18 = vmax.f32 %v3906_v11, 0.0  ;;  %v5358_v55 = vadd.f32 %v5288_v13, %v6796_v6  ;;  %v3738_v25 = vpop.f32.mrb[5].mxu1 }
 0x399   : > { %v3936_v49 = vmax.f32 %v3904_v48, 0.0  ;;  %v5359_v44 = vadd.f32 %v3738_v25, %v6798_v7  ;;  %v5289_v60 = vpop.f32.mrb[6].mxu1 }
 0x39a   : > { %v3964_v61 = vpack.c.bf16 %v3938_v18, %v3937_v15  ;;  %v3870_v24 = vmul.f32 %v5358_v55, %v6847_v8  ;;  %v5360_v36 = vadd.f32 %v5289_v60, %v6800_v43  ;;  %v3741_v37 = vpop.f32.mrb[7].mxu1 }
 0x39b   : > { %v3963_v38 = vpack.c.bf16 %v3936_v49, %v3935_v39  ;;  %v3868_v45 = vmul.f32 %v5359_v44, %v6847_v8  ;;  %v5361_v35 = vadd.f32 %v3741_v37, %v6802_v46 }
 0x39c   : > { %v3909_v4 = vadd.f32 %v6852_v51, %v3870_v24  ;;  %v3871_v6 = vmul.f32 %v5360_v36, %v6847_v8 }
 0x39d   : > { %v3907_v42 = vadd.f32 %v6852_v51, %v3868_v45  ;;  %v3869_v7 = vmul.f32 %v5361_v35, %v6847_v8  ;;  %5318 = vmatprep.mubr.msk.bf16.mxu0 %vm410_vm0, %v3963_v38 }
 0x39e   : > { %v3910_v54 = vadd.f32 %v6852_v51, %v3871_v6  ;;  %5319 = vmatmul.mubr.msk.bf16.gmra.mrb[72].mxu0 %vm410_vm0, %v3964_v61  ;;  %v3941_v17 = vmax.f32 %v3909_v4, 0.0 }
 0x39f   : > { %v3908_v43 = vadd.f32 %v6852_v51, %v3869_v7  ;;  %v5292_v58 = vpop.f32.mrb[8].mxu1  ;;  %v3939_v21 = vmax.f32 %v3907_v42, 0.0 }
 0x3a0   : > { %v3942_v40 = vmax.f32 %v3910_v54, 0.0  ;;  %v5362_v46 = vadd.f32 %v5292_v58, %v6808_v5  ;;  %v3754_v20 = vpop.f32.mrb[9].mxu1 }
 0x3a1   : > { %v3940_v27 = vmax.f32 %v3908_v43, 0.0  ;;  %v5363_v52 = vadd.f32 %v3754_v20, %v6810_v1  ;;  %v5293_v56 = vpop.f32.mrb[10].mxu1 }
 0x3a2   : > { %v3966_v23 = vpack.c.bf16 %v3942_v40, %v3941_v17  ;;  %v3874_v31 = vmul.f32 %v5362_v46, %v6847_v8  ;;  %v5364_v10 = vadd.f32 %v5293_v56, %v6812_v22  ;;  %v3757_v12 = vpop.f32.mrb[11].mxu1 }
 0x3a3   : > { %v3965_v33 = vpack.c.bf16 %v3940_v27, %v3939_v21  ;;  %v3872_v47 = vmul.f32 %v5363_v52, %v6847_v8  ;;  %v5365_v59 = vadd.f32 %v3757_v12, %v6814_v28 }
 0x3a4   : > { %v3913_v62 = vadd.f32 %v6852_v51, %v3874_v31  ;;  %v3875_v5 = vmul.f32 %v5364_v10, %v6847_v8 }
 0x3a5   : > { %v3911_v3 = vadd.f32 %v6852_v51, %v3872_v47  ;;  %v3873_v1 = vmul.f32 %v5365_v59, %v6847_v8  ;;  %5322 = vmatprep.mubr.msk.bf16.mxu0 %vm410_vm0, %v3965_v33 }
 0x3a6   : > { %v3914_v0 = vadd.f32 %v6852_v51, %v3875_v5  ;;  %5323 = vmatmul.mubr.msk.bf16.gmra.mrb[76].mxu0 %vm410_vm0, %v3966_v23  ;;  %v3945_v63 = vmax.f32 %v3913_v62, 0.0 }
 0x3a7   : > { %v3912_v22 = vadd.f32 %v6852_v51, %v3873_v1  ;;  %v5296_v19 = vpop.f32.mrb[12].mxu1  ;;  %v3943_v48 = vmax.f32 %v3911_v3, 0.0 }
 0x3a8   : > { %v3946_v26 = vmax.f32 %v3914_v0, 0.0  ;;  %v5366_v28 = vadd.f32 %v5296_v19, %v6817_v29  ;;  %v3770_v11 = vpop.f32.mrb[13].mxu1 }
 0x3a9   : > { %v3944_v13 = vmax.f32 %v3912_v22, 0.0  ;;  %v5367_v15 = vadd.f32 %v3770_v11, %v6819_v30  ;;  %v5297_v18 = vpop.f32.mrb[14].mxu1 }
 0x3aa   : > { %v3968_v55 = vpack.c.bf16 %v3946_v26, %v3945_v63  ;;  %v3878_v25 = vmul.f32 %v5366_v28, %v6847_v8  ;;  %v5368_v39 = vadd.f32 %v5297_v18, %v6821_v32  ;;  %v3773_v49 = vpop.f32.mrb[15].mxu1 }
 0x3ab   : > { %v3967_v44 = vpack.c.bf16 %v3944_v13, %v3943_v48  ;;  %v3876_v60 = vmul.f32 %v5367_v15, %v6847_v8  ;;  %v5369_v61 = vadd.f32 %v3773_v49, %v6823_v50 }
 0x3ac   : > { %v3917_v24 = vadd.f32 %v6852_v51, %v3878_v25  ;;  %v3879_v29 = vmul.f32 %v5368_v39, %v6847_v8 }
 0x3ad   : > { %v3915_v36 = vadd.f32 %v6852_v51, %v3876_v60  ;;  %v3877_v30 = vmul.f32 %v5369_v61, %v6847_v8  ;;  %5326 = vmatprep.mubr.msk.bf16.mxu0 %vm410_vm0, %v3967_v44 }
 0x3ae   : > { %v3918_v37 = vadd.f32 %v6852_v51, %v3879_v29  ;;  %5327 = vmatmul.mubr.msk.bf16.gmra.mrb[80].mxu0 %vm410_vm0, %v3968_v55  ;;  %v3949_v45 = vmax.f32 %v3917_v24, 0.0 }
 0x3af   : > { %v3916_v32 = vadd.f32 %v6852_v51, %v3877_v30  ;;  %v5300_v38 = vpop.f32.mrb[16].mxu1  ;;  %v3947_v6 = vmax.f32 %v3915_v36, 0.0 }
 0x3b0   : > { %v3950_v35 = vmax.f32 %v3918_v37, 0.0  ;;  %v5370_v50 = vadd.f32 %v5300_v38, %v6825_v57  ;;  %v3786_v4 = vpop.f32.mrb[17].mxu1  ;;  %v5710_v37 = vld [vmem:[%s6111_s24 + $0x10] sm:$0xff] }
 0x3b1   : > { %v3948_v42 = vmax.f32 %v3916_v32, 0.0  ;;  %v5371_v7 = vadd.f32 %v3786_v4, %v6827_v9  ;;  %v5301_v54 = vpop.f32.mrb[18].mxu1 }
 0x3b2   : > { %v3970_v43 = vpack.c.bf16 %v3950_v35, %v3949_v45  ;;  %v3882_v58 = vmul.f32 %v5370_v50, %v6847_v8  ;;  %v5372_v17 = vadd.f32 %v5301_v54, %v6829_v14  ;;  %v3789_v40 = vpop.f32.mrb[19].mxu1  ;;  %v5711_v45 = vld [vmem:[%s6111_s24] sm:$0xff]  ;;  %v5713_v54 = vld [vmem:[%s6111_s24 + $0x8] sm:$0xff] }
 0x3b3   : > { %v3969_v46 = vpack.c.bf16 %v3948_v42, %v3947_v6  ;;  %v3880_v20 = vmul.f32 %v5371_v7, %v6847_v8  ;;  %v5373_v21 = vadd.f32 %v3789_v40, %v6831_v34  ;;  %v5712_v6 = vld [vmem:[%s6111_s24 + $0x18] sm:$0xff] }
 0x3b4   : > { %v3921_v27 = vadd.f32 %v6852_v51, %v3882_v58  ;;  %v3883_v57 = vmul.f32 %v5372_v17, %v6847_v8 }
 0x3b5   : > { %v3919_v52 = vadd.f32 %v6852_v51, %v3880_v20  ;;  %v3881_v9 = vmul.f32 %v5373_v21, %v6847_v8  ;;  %5330 = vmatprep.mubr.msk.bf16.mxu0 %vm410_vm0, %v3969_v46 }
 0x3b6   : > { %v3922_v56 = vadd.f32 %v6852_v51, %v3883_v57  ;;  %5331 = vmatmul.mubr.msk.bf16.gmra.mrb[84].mxu0 %vm410_vm0, %v3970_v43  ;;  %v3953_v31 = vmax.f32 %v3921_v27, 0.0 }
 0x3b7   : > { %v3920_v14 = vadd.f32 %v6852_v51, %v3881_v9  ;;  %v5304_v23 = vpop.f32.mrb[20].mxu1  ;;  %v3951_v33 = vmax.f32 %v3919_v52, 0.0 }
 0x3b8   : > { %v3954_v10 = vmax.f32 %v3922_v56, 0.0  ;;  %v5374_v34 = vadd.f32 %v5304_v23, %v6833_v41  ;;  %v3802_v12 = vpop.f32.mrb[21].mxu1  ;;  %v5714_v23 = vld [vmem:[%s6111_s24 + $0x30] sm:$0xff] }
 0x3b9   : > { %v3952_v47 = vmax.f32 %v3920_v14, 0.0  ;;  %v5375_v59 = vadd.f32 %v3802_v12, %v6835_v53  ;;  %v5305_v62 = vpop.f32.mrb[22].mxu1 }
 0x3ba   : > { %v3972_v5 = vpack.c.bf16 %v3954_v10, %v3953_v31  ;;  %v3886_v3 = vmul.f32 %v5374_v34, %v6847_v8  ;;  %v5376_v1 = vadd.f32 %v5305_v62, %v6837_v16  ;;  %v3805_v0 = vpop.f32.mrb[23].mxu1  ;;  %v5715_v34 = vld [vmem:[%s6111_s24 + $0x20] sm:$0xff] }
 0x3bb   : > { %v3971_v22 = vpack.c.bf16 %v3952_v47, %v3951_v33  ;;  %v3884_v19 = vmul.f32 %v5375_v59, %v6847_v8  ;;  %v5377_v63 = vadd.f32 %v3805_v0, %v6839_v2  ;;  %v5716_v59 = vld [vmem:[%s6111_s24 + $0x38] sm:$0xff] }
 0x3bc   : > { %v3925_v26 = vadd.f32 %v6852_v51, %v3886_v3  ;;  %v3887_v41 = vmul.f32 %v5376_v1, %v6847_v8  ;;  %v5717_v3 = vld [vmem:[%s6111_s24 + $0x28] sm:$0xff] }
 0x3bd   : > { %v3923_v28 = vadd.f32 %v6852_v51, %v3884_v19  ;;  %v3885_v53 = vmul.f32 %v5377_v63, %v6847_v8  ;;  %5334 = vmatprep.mubr.msk.bf16.mxu0 %vm410_vm0, %v3971_v22  ;;  %v6961_v8 = vld [vmem:[%s7164_s8] ss:$0 sm:$0xff] }
 0x3be   : > { %v3926_v11 = vadd.f32 %v6852_v51, %v3887_v41  ;;  %5335 = vmatmul.mubr.msk.bf16.gmra.mrb[88].mxu0 %vm410_vm0, %v3972_v5  ;;  %v3957_v48 = vmax.f32 %v3925_v26, 0.0 }
 0x3bf   : > { %v3924_v16 = vadd.f32 %v6852_v51, %v3885_v53  ;;  %v3955_v15 = vmax.f32 %v3923_v28, 0.0  ;;  %v6966_v51 = vld [vmem:[%s7165_s9] ss:$0 sm:$0xff] }
 0x3c0   : > { %v3958_v13 = vmax.f32 %v3926_v11, 0.0 }
 0x3c1   : > { %v3956_v2 = vmax.f32 %v3924_v16, 0.0 }
 0x3c2   : > { %v3974_v18 = vpack.c.bf16 %v3958_v13, %v3957_v48 }
 0x3c3   : > { %v3973_v55 = vpack.c.bf16 %v3956_v2, %v3955_v15  ;;  %v5718_v15 = vld [vmem:[%s6111_s24 + $0x50] sm:$0xff] }
 0x3c5   : > { %5338 = vmatprep.mubr.msk.bf16.mxu0 %vm410_vm0, %v3973_v55  ;;  %v5719_v55 = vld [vmem:[%s6111_s24 + $0x40] sm:$0xff] }
 0x3c6   : > { %5339 = vmatmul.mubr.msk.bf16.gmra.mrb[92].mxu0 %vm410_vm0, %v3974_v18 }
 0x461   : > { %v5312_v25 = vpop.f32.mrb[64].mxu0 }
 0x462   : > { %v4209_v39 = vmul.f32 %v5312_v25, %v6961_v8  ;;  %v4073_v49 = vpop.f32.mrb[65].mxu0 }
 0x463   : > { %v4207_v44 = vmul.f32 %v6961_v8, %v4073_v49  ;;  %v5313_v60 = vpop.f32.mrb[66].mxu0 }
 0x464   : > { %v4248_v61 = vadd.f32 %v6966_v51, %v4209_v39  ;;  %v4210_v24 = vmul.f32 %v5313_v60, %v6961_v8  ;;  %v4076_v29 = vpop.f32.mrb[67].mxu0 }
 0x465   : > { %v4246_v36 = vadd.f32 %v6966_v51, %v4207_v44  ;;  %v4208_v30 = vmul.f32 %v6961_v8, %v4076_v29  ;;  %v5720_v44 = vld [vmem:[%s6111_s24 + $0x58] sm:$0xff] }
 0x466   : > { %v4280_v32 = vadd.f32 %v5710_v37, %v4248_v61  ;;  %v4249_v38 = vadd.f32 %v6966_v51, %v4210_v24  ;;  %v5721_v24 = vld [vmem:[%s6111_s24 + $0x48] sm:$0xff] }
 0x467   : > { %v4278_v35 = vadd.f32 %v5711_v45, %v4246_v36  ;;  %v4247_v50 = vadd.f32 %v6966_v51, %v4208_v30 }
 0x468   : > { %v4312_v4 = vmax.f32 %v4280_v32, 0.0  ;;  %v4281_v42 = vadd.f32 %v5712_v6, %v4249_v38 }
 0x469   : > { %v4310_v7 = vmax.f32 %v4278_v35, 0.0  ;;  %v4279_v43 = vadd.f32 %v5713_v54, %v4247_v50  ;;  %v5316_v58 = vpop.f32.mrb[68].mxu0  ;;  %v5722_v54 = vld [vmem:[%s6111_s24 + $0x70] sm:$0xff] }
 0x46a   : > { %4344 = vst [vmem:[%s6982_s26 + $0x10] sm:$0xff] %v4312_v4  ;;  %v4313_v17 = vmax.f32 %v4281_v42, 0.0  ;;  %v4213_v40 = vmul.f32 %v5316_v58, %v6961_v8  ;;  %v4089_v46 = vpop.f32.mrb[69].mxu0 }
 0x46b   : > { %4342 = vst [vmem:[%s6982_s26] sm:$0xff] %v4310_v7  ;;  %v4311_v20 = vmax.f32 %v4279_v43, 0.0  ;;  %v4211_v21 = vmul.f32 %v6961_v8, %v4089_v46  ;;  %v5317_v27 = vpop.f32.mrb[70].mxu0 }
 0x46c   : > { %4345 = vst [vmem:[%s6982_s26 + $0x18] sm:$0xff] %v4313_v17  ;;  %v4252_v57 = vadd.f32 %v6966_v51, %v4213_v40  ;;  %v4214_v52 = vmul.f32 %v5317_v27, %v6961_v8  ;;  %v4092_v9 = vpop.f32.mrb[71].mxu0  ;;  %v5723_v17 = vld [vmem:[%s6111_s24 + $0x60] sm:$0xff] }
 0x46d   : > { %4343 = vst [vmem:[%s6982_s26 + $0x8] sm:$0xff] %v4311_v20  ;;  %v4250_v56 = vadd.f32 %v6966_v51, %v4211_v21  ;;  %v4212_v14 = vmul.f32 %v6961_v8, %v4092_v9  ;;  %v5724_v21 = vld [vmem:[%s6111_s24 + $0x78] sm:$0xff] }
 0x46e   : > { %v4284_v31 = vadd.f32 %v5714_v23, %v4252_v57  ;;  %v4253_v10 = vadd.f32 %v6966_v51, %v4214_v52  ;;  %v5725_v52 = vld [vmem:[%s6111_s24 + $0x68] sm:$0xff] }
 0x46f   : > { %v4282_v12 = vadd.f32 %v5715_v34, %v4250_v56  ;;  %v4251_v33 = vadd.f32 %v6966_v51, %v4212_v14 }
 0x470   : > { %v4316_v47 = vmax.f32 %v4284_v31, 0.0  ;;  %v4285_v62 = vadd.f32 %v5716_v59, %v4253_v10 }
 0x471   : > { %v4314_v5 = vmax.f32 %v4282_v12, 0.0  ;;  %v4283_v1 = vadd.f32 %v5717_v3, %v4251_v33  ;;  %v5320_v0 = vpop.f32.mrb[72].mxu0  ;;  %v5726_v3 = vld [vmem:[%s6111_s24 + $0x90] sm:$0xff] }
 0x472   : > { %4348 = vst [vmem:[%s6982_s26 + $0x30] sm:$0xff] %v4316_v47  ;;  %v4317_v22 = vmax.f32 %v4285_v62, 0.0  ;;  %v4217_v19 = vmul.f32 %v5320_v0, %v6961_v8  ;;  %v4105_v63 = vpop.f32.mrb[73].mxu0 }
 0x473   : > { %4346 = vst [vmem:[%s6982_s26 + $0x20] sm:$0xff] %v4314_v5  ;;  %v4315_v26 = vmax.f32 %v4283_v1, 0.0  ;;  %v4215_v41 = vmul.f32 %v6961_v8, %v4105_v63  ;;  %v5321_v28 = vpop.f32.mrb[74].mxu0 }
 0x474   : > { %4349 = vst [vmem:[%s6982_s26 + $0x38] sm:$0xff] %v4317_v22  ;;  %v4256_v53 = vadd.f32 %v6966_v51, %v4217_v19  ;;  %v4218_v11 = vmul.f32 %v5321_v28, %v6961_v8  ;;  %v4108_v16 = vpop.f32.mrb[75].mxu0  ;;  %v5727_v22 = vld [vmem:[%s6111_s24 + $0x80] sm:$0xff] }
 0x475   : > { %4347 = vst [vmem:[%s6982_s26 + $0x28] sm:$0xff] %v4315_v26  ;;  %v4254_v48 = vadd.f32 %v6966_v51, %v4215_v41  ;;  %v4216_v13 = vmul.f32 %v6961_v8, %v4108_v16  ;;  %v5728_v41 = vld [vmem:[%s6111_s24 + $0x98] sm:$0xff] }
 0x476   : > { %v4288_v2 = vadd.f32 %v5718_v15, %v4256_v53  ;;  %v4257_v18 = vadd.f32 %v6966_v51, %v4218_v11  ;;  %v5729_v11 = vld [vmem:[%s6111_s24 + $0x88] sm:$0xff] }
 0x477   : > { %v4286_v25 = vadd.f32 %v5719_v55, %v4254_v48  ;;  %v4255_v39 = vadd.f32 %v6966_v51, %v4216_v13 }
 0x478   : > { %v4320_v49 = vmax.f32 %v4288_v2, 0.0  ;;  %v4289_v60 = vadd.f32 %v5720_v44, %v4257_v18 }
 0x479   : > { %v4318_v61 = vmax.f32 %v4286_v25, 0.0  ;;  %v4287_v29 = vadd.f32 %v5721_v24, %v4255_v39  ;;  %v5324_v36 = vpop.f32.mrb[76].mxu0  ;;  %v5730_v24 = vld [vmem:[%s6111_s24 + $0xb0] sm:$0xff] }
 0x47a   : > { %4352 = vst [vmem:[%s6982_s26 + $0x50] sm:$0xff] %v4320_v49  ;;  %v4321_v30 = vmax.f32 %v4289_v60, 0.0  ;;  %v4221_v37 = vmul.f32 %v5324_v36, %v6961_v8  ;;  %v4121_v32 = vpop.f32.mrb[77].mxu0 }
 0x47b   : > { %4350 = vst [vmem:[%s6982_s26 + $0x40] sm:$0xff] %v4318_v61  ;;  %v4319_v38 = vmax.f32 %v4287_v29, 0.0  ;;  %v4219_v45 = vmul.f32 %v6961_v8, %v4121_v32  ;;  %v5325_v35 = vpop.f32.mrb[78].mxu0 }
 0x47c   : > { %4353 = vst [vmem:[%s6982_s26 + $0x58] sm:$0xff] %v4321_v30  ;;  %v4260_v50 = vadd.f32 %v6966_v51, %v4221_v37  ;;  %v4222_v4 = vmul.f32 %v5325_v35, %v6961_v8  ;;  %v4124_v6 = vpop.f32.mrb[79].mxu0  ;;  %v5731_v30 = vld [vmem:[%s6111_s24 + $0xa0] sm:$0xff] }
 0x47d   : > { %4351 = vst [vmem:[%s6982_s26 + $0x48] sm:$0xff] %v4319_v38  ;;  %v4258_v42 = vadd.f32 %v6966_v51, %v4219_v45  ;;  %v4220_v7 = vmul.f32 %v6961_v8, %v4124_v6  ;;  %v5732_v45 = vld [vmem:[%s6111_s24 + $0xb8] sm:$0xff] }
 0x47e   : > { %v4292_v43 = vadd.f32 %v5722_v54, %v4260_v50  ;;  %v4261_v58 = vadd.f32 %v6966_v51, %v4222_v4  ;;  %v5733_v4 = vld [vmem:[%s6111_s24 + $0xa8] sm:$0xff] }
 0x47f   : > { %v4290_v40 = vadd.f32 %v5723_v17, %v4258_v42  ;;  %v4259_v46 = vadd.f32 %v6966_v51, %v4220_v7 }
 0x480   : > { %v4324_v20 = vmax.f32 %v4292_v43, 0.0  ;;  %v4293_v27 = vadd.f32 %v5724_v21, %v4261_v58 }
 0x481   : > { %v4322_v57 = vmax.f32 %v4290_v40, 0.0  ;;  %v4291_v9 = vadd.f32 %v5725_v52, %v4259_v46  ;;  %v5328_v56 = vpop.f32.mrb[80].mxu0  ;;  %v5734_v52 = vld [vmem:[%s6111_s24 + $0xd0] sm:$0xff] }
 0x482   : > { %4356 = vst [vmem:[%s6982_s26 + $0x70] sm:$0xff] %v4324_v20  ;;  %v4325_v14 = vmax.f32 %v4293_v27, 0.0  ;;  %v4225_v23 = vmul.f32 %v5328_v56, %v6961_v8  ;;  %v4137_v31 = vpop.f32.mrb[81].mxu0 }
 0x483   : > { %4354 = vst [vmem:[%s6982_s26 + $0x60] sm:$0xff] %v4322_v57  ;;  %v4323_v10 = vmax.f32 %v4291_v9, 0.0  ;;  %v4223_v34 = vmul.f32 %v6961_v8, %v4137_v31  ;;  %v5329_v12 = vpop.f32.mrb[82].mxu0 }
 0x484   : > { %4357 = vst [vmem:[%s6982_s26 + $0x78] sm:$0xff] %v4325_v14  ;;  %v4264_v33 = vadd.f32 %v6966_v51, %v4225_v23  ;;  %v4226_v47 = vmul.f32 %v5329_v12, %v6961_v8  ;;  %v4140_v59 = vpop.f32.mrb[83].mxu0  ;;  %v5735_v14 = vld [vmem:[%s6111_s24 + $0xc0] sm:$0xff] }
 0x485   : > { %4355 = vst [vmem:[%s6982_s26 + $0x68] sm:$0xff] %v4323_v10  ;;  %v4262_v62 = vadd.f32 %v6966_v51, %v4223_v34  ;;  %v4224_v5 = vmul.f32 %v6961_v8, %v4140_v59  ;;  %v5736_v34 = vld [vmem:[%s6111_s24 + $0xd8] sm:$0xff] }
 0x486   : > { %v4296_v1 = vadd.f32 %v5726_v3, %v4264_v33  ;;  %v4265_v0 = vadd.f32 %v6966_v51, %v4226_v47  ;;  %v5737_v47 = vld [vmem:[%s6111_s24 + $0xc8] sm:$0xff] }
 0x487   : > { %v4294_v19 = vadd.f32 %v5727_v22, %v4262_v62  ;;  %v4263_v63 = vadd.f32 %v6966_v51, %v4224_v5 }
 0x488   : > { %v4328_v26 = vmax.f32 %v4296_v1, 0.0  ;;  %v4297_v28 = vadd.f32 %v5728_v41, %v4265_v0 }
 0x489   : > { %v4326_v53 = vmax.f32 %v4294_v19, 0.0  ;;  %v4295_v16 = vadd.f32 %v5729_v11, %v4263_v63  ;;  %v5332_v48 = vpop.f32.mrb[84].mxu0  ;;  %v5738_v11 = vld [vmem:[%s6111_s24 + $0xf0] sm:$0xff] }
 0x48a   : > { %4360 = vst [vmem:[%s6982_s26 + $0x90] sm:$0xff] %v4328_v26  ;;  %v4329_v13 = vmax.f32 %v4297_v28, 0.0  ;;  %v4229_v15 = vmul.f32 %v5332_v48, %v6961_v8  ;;  %v4153_v2 = vpop.f32.mrb[85].mxu0 }
 0x48b   : > { %4358 = vst [vmem:[%s6982_s26 + $0x80] sm:$0xff] %v4326_v53  ;;  %v4327_v18 = vmax.f32 %v4295_v16, 0.0  ;;  %v4227_v55 = vmul.f32 %v6961_v8, %v4153_v2  ;;  %v5333_v25 = vpop.f32.mrb[86].mxu0 }
 0x48c   : > { %4361 = vst [vmem:[%s6982_s26 + $0x98] sm:$0xff] %v4329_v13  ;;  %v4268_v39 = vadd.f32 %v6966_v51, %v4229_v15  ;;  %v4230_v49 = vmul.f32 %v5333_v25, %v6961_v8  ;;  %v4156_v44 = vpop.f32.mrb[87].mxu0  ;;  %v5739_v13 = vld [vmem:[%s6111_s24 + $0xe0] sm:$0xff] }
 0x48d   : > { %4359 = vst [vmem:[%s6982_s26 + $0x88] sm:$0xff] %v4327_v18  ;;  %v4266_v60 = vadd.f32 %v6966_v51, %v4227_v55  ;;  %v4228_v61 = vmul.f32 %v6961_v8, %v4156_v44  ;;  %v5740_v55 = vld [vmem:[%s6111_s24 + $0xf8] sm:$0xff] }
 0x48e   : > { %v4300_v29 = vadd.f32 %v5730_v24, %v4268_v39  ;;  %v4269_v36 = vadd.f32 %v6966_v51, %v4230_v49 }
 0x48f   : > { %v4298_v37 = vadd.f32 %v5731_v30, %v4266_v60  ;;  %v4267_v32 = vadd.f32 %v6966_v51, %v4228_v61 }
 0x490   : > { %v4332_v38 = vmax.f32 %v4300_v29, 0.0  ;;  %v4301_v35 = vadd.f32 %v5732_v45, %v4269_v36 }
 0x491   : > { %v4330_v50 = vmax.f32 %v4298_v37, 0.0  ;;  %v4299_v6 = vadd.f32 %v5733_v4, %v4267_v32  ;;  %v5336_v42 = vpop.f32.mrb[88].mxu0 }
 0x492   : > { %4364 = vst [vmem:[%s6982_s26 + $0xb0] sm:$0xff] %v4332_v38  ;;  %v4333_v7 = vmax.f32 %v4301_v35, 0.0  ;;  %v4233_v54 = vmul.f32 %v5336_v42, %v6961_v8  ;;  %v4169_v43 = vpop.f32.mrb[89].mxu0 }
 0x493   : > { %4362 = vst [vmem:[%s6982_s26 + $0xa0] sm:$0xff] %v4330_v50  ;;  %v4331_v58 = vmax.f32 %v4299_v6, 0.0  ;;  %v4231_v17 = vmul.f32 %v6961_v8, %v4169_v43  ;;  %v5337_v40 = vpop.f32.mrb[90].mxu0 }
 0x494   : > { %4365 = vst [vmem:[%s6982_s26 + $0xb8] sm:$0xff] %v4333_v7  ;;  %v4272_v46 = vadd.f32 %v6966_v51, %v4233_v54  ;;  %v4234_v20 = vmul.f32 %v5337_v40, %v6961_v8  ;;  %v4172_v21 = vpop.f32.mrb[91].mxu0 }
 0x495   : > { %4363 = vst [vmem:[%s6982_s26 + $0xa8] sm:$0xff] %v4331_v58  ;;  %v4270_v27 = vadd.f32 %v6966_v51, %v4231_v17  ;;  %v4232_v57 = vmul.f32 %v6961_v8, %v4172_v21 }
 0x496   : > { %v4304_v9 = vadd.f32 %v5734_v52, %v4272_v46  ;;  %v4273_v56 = vadd.f32 %v6966_v51, %v4234_v20 }
 0x497   : > { %v4302_v23 = vadd.f32 %v5735_v14, %v4270_v27  ;;  %v4271_v31 = vadd.f32 %v6966_v51, %v4232_v57 }
 0x498   : > { %v4336_v10 = vmax.f32 %v4304_v9, 0.0  ;;  %v4305_v12 = vadd.f32 %v5736_v34, %v4273_v56 }
 0x499   : > { %v4334_v33 = vmax.f32 %v4302_v23, 0.0  ;;  %v4303_v59 = vadd.f32 %v5737_v47, %v4271_v31  ;;  %v5340_v62 = vpop.f32.mrb[92].mxu0 }
 0x49a   : > { %4368 = vst [vmem:[%s6982_s26 + $0xd0] sm:$0xff] %v4336_v10  ;;  %v4337_v5 = vmax.f32 %v4305_v12, 0.0  ;;  %v4237_v3 = vmul.f32 %v5340_v62, %v6961_v8  ;;  %v4185_v1 = vpop.f32.mrb[93].mxu0 }
 0x49b   : > { %4366 = vst [vmem:[%s6982_s26 + $0xc0] sm:$0xff] %v4334_v33  ;;  %v4335_v0 = vmax.f32 %v4303_v59, 0.0  ;;  %v4235_v22 = vmul.f32 %v6961_v8, %v4185_v1  ;;  %v5341_v19 = vpop.f32.mrb[94].mxu0 }
 0x49c   : > { %4369 = vst [vmem:[%s6982_s26 + $0xd8] sm:$0xff] %v4337_v5  ;;  %v4276_v63 = vadd.f32 %v6966_v51, %v4237_v3  ;;  %v4238_v26 = vmul.f32 %v5341_v19, %v6961_v8  ;;  %v4188_v41 = vpop.f32.mrb[95].mxu0 }
 0x49d   : > { %4367 = vst [vmem:[%s6982_s26 + $0xc8] sm:$0xff] %v4335_v0  ;;  %v4274_v28 = vadd.f32 %v6966_v51, %v4235_v22  ;;  %v4236_v53 = vmul.f32 %v6961_v8, %v4188_v41  ;;  %v5741_v8 = vld [vmem:[%s6111_s24 + $0xe8] sm:$0xff]  ;;  %s5895_s24 = smov [#allocation8]  }
 0x49e   : > { %v4308_v16 = vadd.f32 %v5738_v11, %v4276_v63  ;;  %v4277_v48 = vadd.f32 %v6966_v51, %v4238_v26  ;;  %s5804_s13 = sshll.u32 %s5895_s24, 4  ;;  %s5805_s13 = int_to_ptr.vmem [resolvable:$false] %s5804_s13 }
 0x49f   : > { %v4306_v15 = vadd.f32 %v5739_v13, %v4274_v28  ;;  %v4275_v2 = vadd.f32 %v6966_v51, %v4236_v53  ;;  %s5806_s12 = scalar_lea.vmem %s5805_s13, 8192  ;;  %p5807_p12 = scmp.lt.s32.totalorder %s7104_s4, %s5805_s13 }
 0x4a0   : > { %v4340_v18 = vmax.f32 %v4308_v16, 0.0  ;;  %v4309_v25 = vadd.f32 %v5740_v55, %v4277_v48  ;;  %p5808_p11 = scmp.lt.s32.totalorder %s5806_s12, %s5800_s28 }
 0x4a1   : > { %v4338_v39 = vmax.f32 %v4306_v15, 0.0  ;;  %v4307_v49 = vadd.f32 %v5741_v8, %v4275_v2 }
 0x4a2   : > { %4372 = vst [vmem:[%s6982_s26 + $0xf0] sm:$0xff] %v4340_v18  ;;  %v4341_v44 = vmax.f32 %v4309_v25, 0.0  ;;  %p5809_p0 = por %p5808_p11, %p5807_p12 }
 0x4a3   : > { %4370 = vst [vmem:[%s6982_s26 + $0xe0] sm:$0xff] %v4338_v39  ;;  %v4339_v51 = vmax.f32 %v4307_v49, 0.0 }
 0x4a4   : > { %4373 = vst [vmem:[%s6982_s26 + $0xf8] sm:$0xff] %v4341_v44  ;;  %p5810_p5 = pnand %p5809_p0, %p5803_p8 }
 0x4a5   : > { %4371 = vst [vmem:[%s6982_s26 + $0xe8] sm:$0xff] %v4339_v51 }
 0x4a6   : > { %5813 = shalt.err (!%p5810_p5)
}
 0x4a7   : > { %s5814_s11 = scalar_lea.hbm %s7102_s25, 4096  ;;  %s5818_s27 = scalar_lea.hbm %s7192_s23, 8192 }
 0x4a8   : > { %p5815_p9 = scmp.ne.s32.totalorder %s7102_s25, %s5814_s11  ;;  %p5819_p3 = scmp.lt.u32.totalorder %s7102_s25, %s7192_s23 }
 0x4a9   : > { %p5820_p7 = scmp.lt.u32.totalorder %s5818_s27, %s5814_s11  ;;  %p5822_p4 = scmp.lt.u32.totalorder %s5814_s11, %s7102_s25 }
 0x4aa   : > { %p5816_p1 = pnand %p5815_p9, %p6049_p10 }
 0x4ab   : > { %p5821_p13 = por %p5820_p7, %p5819_p3 }
 0x4ac   : > { %p5817_p2 = pneg %p5816_p1 }
 0x4ad   : > { %p5823_p6 = por %p5822_p4, %p5821_p13 }
 0x4af   : > { %p5824_p8 = pnand %p5823_p6, %p5817_p2 }
 0x4b1   : > { %5827 = shalt.err (!%p5824_p8)
}
 0x4b2   : > { %s5896_s28 = smov 128   ;;  %s5897_s24 = smov 8  }
 0x4b3   : > { %5608 = dma.vmem_to_hbm [thread:$0]  (%p6049_p10), %s7104_s4, 4096, %s7102_s25, %s4375_s16, %s5896_s28, %s5896_s28, %s5897_s24  }
 0x4b4 PF: > { %s7193_s13 = sld [smem:[#allocation12_spill]]  ;;  %s7194_s12 = sld [smem:[#allocation13_spill]] }
 0x4b5   : > { %p7196_p11 = scmp.ge.s32.totalorder %s5886_s18, 2 }
 0x4ba   : > { %s4406_s19 = sand.u32 1, %s7193_s13   ;;  %p7195_p12 = scmp.ne.s32.totalorder %s7194_s12, 0 }
 0x4bb   : > { %s4407_s11 = scalar_lea.sflag [#allocation5], %s4406_s19 }
 0x4bc   : > { %p5619_p0 = pnand %p7196_p11, %p7195_p12 }
 0x4be   : > { %5861 = dma.done.wait (!%p5619_p0), %s4407_s11, 4096  }
 0x4bf   : > { %5863 = vsyncadd (!%p5619_p0), %s4407_s11, 4294963200  ;;  %s27_s18 = sadd.s32 1, %s5886_s18   ;;  %s7197_s13 = smov %s5870_s14 }
 0x4c0   : > { %p24_p5 = scmp.ge.s32.totalorder %s27_s18, 4   ;;  %s7198_s14 = smov %s5874_s15 }
 0x4c1   : > { %s7199_s15 = smov %s6058_s30  ;;  %s7200_s16 = smov %s5882_s17 }
 0x4c2   : > { %s7201_s17 = smov %s7203_s29  ;;  %26 = sbr.rel (!%p24_p5) target bundleno = 10 (0xa), region = 131 }
 0x4c9   :  { %4412 = vsyncpa [#allocation4], 1 }
 0x4ca   :  { %4414 = vsyncpa [#allocation4 + $0x1], 1 }
 0x4cb   :  { %4415 = vsyncpa [#allocation7], 1 }
 0x4cc   :  { %4416 = vsyncpa [#allocation5], 1 }
 0x4cd   :  { %4418 = vsyncpa [#allocation5 + $0x1], 1 }

</bundles_post_ra>
